<compile_context>
chip_gen: v7x
topology: tpu7x:2x2x1
jax: 0.10.0
libtpu: 0.0.40
codegen_flags: <defaults>
</compile_context>

<pallas_src>
import jax
import jax.numpy as jnp
from jax import lax
from jax.experimental import pallas as pl
from jax.experimental.pallas import tpu as pltpu


# ----------------------------------------------------------------------------
# Fused kernel: LSTM stack (time recurrence) + BN(eval) + ReLU + Linear head
# ----------------------------------------------------------------------------
def _make_fused_kernel(num_layers, T, BT, H, unroll):
    """Build the fused kernel for a static layer count.

    Kernel ref layout:
      inputs : x_ref, [wih_l, whh_l, b_l] * num_layers, bn_scale, bn_shift, w_out, b_out
      outputs: out_ref (BT, 128)
      scratch: 1 or 2 gx scratches (T*BT, 4H) f32 (ping-pong between layers)
    Gate order is [i, f, o, g] (reordered at param-build time from PyTorch's [i, f, g, o]).
    """
    n_gx = 2 if num_layers > 1 else 1

    def kernel(*args):
        x_ref = args[0]
        layer_refs = args[1:1 + 3 * num_layers]
        (bn_scale_ref, bn_shift_ref,
         w_out_ref, b_out_ref) = args[1 + 3 * num_layers:5 + 3 * num_layers]
        out_ref = args[5 + 3 * num_layers]
        gx_refs = args[6 + 3 * num_layers:]

        # Layer 0: hoisted input projection -> one large MXU matmul for all timesteps of
        # the tile (bias is added per-step together with the recurrent term).
        gx_refs[0][...] = jnp.dot(
            x_ref[0], layer_refs[0][...], preferred_element_type=jnp.float32)

        h_last = None
        for layer in range(num_layers):
            wih_ref, whh_ref, b_ref = layer_refs[3 * layer:3 * layer + 3]
            is_last = layer == num_layers - 1

            gx_cur = gx_refs[layer % n_gx]
            gx_next = None if is_last else gx_refs[(layer + 1) % n_gx]
            wih_next = None if is_last else layer_refs[3 * (layer + 1)][...]

            whh = whh_ref[...]          # (H, 4H) bf16, stays resident in vregs
            bias = b_ref[...]           # (1, 4H) f32

            def step(t, carry, _whh=whh, _bias=bias, _gx_cur=gx_cur,
                     _gx_next=gx_next, _wih_next=wih_next, _is_last=is_last):
                h, c = carry                                    # f32 (BT, H) loop-carried
                row = pl.multiple_of(t * BT, BT)                # sublane-aligned offset
                gates = (_gx_cur[pl.ds(row, BT), :] + _bias
                         + jnp.dot(h.astype(jnp.bfloat16), _whh,
                                   preferred_element_type=jnp.float32))  # (BT, 4H)
                # Gate order [i, f, o, g]: one sigmoid over 3H + one tanh over H.
                ifo = jax.nn.sigmoid(gates[:, :3 * H])
                g = jnp.tanh(gates[:, 3 * H:])
                i = ifo[:, 0 * H:1 * H]
                f = ifo[:, 1 * H:2 * H]
                o = ifo[:, 2 * H:3 * H]
                c_new = f * c + i * g
                h_new = o * jnp.tanh(c_new)
                if not _is_last:
                    # Fused next-layer input projection: write full-lane-width (BT, 4H)
                    # rows directly into the next layer's gx scratch (no hseq pass,
                    # no masked (BT, H) stores). The tiny matmul hides in MXU slack.
                    _gx_next[pl.ds(row, BT), :] = jnp.dot(
                        h_new.astype(jnp.bfloat16), _wih_next,
                        preferred_element_type=jnp.float32)
                return h_new, c_new

            h0 = jnp.zeros((BT, H), jnp.float32)
            c0 = jnp.zeros((BT, H), jnp.float32)
            h_last, _ = lax.fori_loop(0, T, step, (h0, c0), unroll=unroll)

        # Head: BatchNorm1d (eval, pre-folded scale/shift) -> ReLU -> Linear(H, 128).
        xbn = h_last * bn_scale_ref[...] + bn_shift_ref[...]
        xr = jnp.maximum(xbn, 0.0)
        out_ref[...] = (
            jnp.dot(xr.astype(jnp.bfloat16), w_out_ref[...],
                    preferred_element_type=jnp.float32)
            + b_out_ref[...]
        )

    return kernel


# ----------------------------------------------------------------------------
# Tiling / VMEM helpers
# ----------------------------------------------------------------------------
def _round_up(x, m):
    return ((x + m - 1) // m) * m


def _tile2d_bytes(rows, cols, itemsize):
    return _round_up(max(rows, 1), 8) * _round_up(max(cols, 1), 128) * itemsize


def _choose_batch_tile(Btot, T, Din, H, num_layers, target, scratch_budget):
    """Largest batch tile <= target (multiple of 16) whose scratch fits the VMEM budget.

    Starts from ceil(Btot/2) so batches > 16 yield >= 2 grid tiles (v7x megacore)."""
    n_gx = 2 if num_layers > 1 else 1
    bt = max(16, min(_round_up(target, 16), _round_up(-(-Btot // 2), 16)))

    def scratch_bytes(b):
        gx = n_gx * _tile2d_bytes(T * b, 4 * H, 4)
        xin = 2 * _tile2d_bytes(T * b, Din, 2)          # double-buffered bf16 input block
        return gx + xin

    while bt > 16 and scratch_bytes(bt) > scratch_budget:
        bt -= 16
    return bt


def _vmem_bytes_estimate(T, BT, Din, H, num_layers, out_dim):
    n_gx = 2 if num_layers > 1 else 1
    b = 2 * _tile2d_bytes(T * BT, Din, 2)                       # x block (double-buffered)
    for layer in range(num_layers):
        d_in = Din if layer == 0 else H
        b += 2 * (_tile2d_bytes(d_in, 4 * H, 2)                 # wih
                  + _tile2d_bytes(H, 4 * H, 2)                  # whh
                  + _tile2d_bytes(1, 4 * H, 4))                 # bias
    b += 2 * (2 * _tile2d_bytes(1, H, 4)                        # bn scale/shift
              + _tile2d_bytes(H, out_dim, 2)                    # w_out
              + _tile2d_bytes(1, out_dim, 4))                   # b_out
    b += 2 * _tile2d_bytes(BT, out_dim, 4)                      # output block
    b += n_gx * _tile2d_bytes(T * BT, 4 * H, 4)                 # gx scratch
    return b


def _full_spec(arr):
    nd = arr.ndim
    return pl.BlockSpec(arr.shape, lambda i, _nd=nd: (0,) * _nd)


# ----------------------------------------------------------------------------
# Wrappers
# ----------------------------------------------------------------------------
def embedding(x_btd, params, *, target_batch_tile=128):
    """x_btd: (B_total, T, input_size) batch-first, same as nn.LSTM(batch_first=True).

    target_batch_tile=128 is MXU-row-filling on v5e; 256 is viable on v6e/v7x if the
    VMEM budget allows (the tile is auto-shrunk to fit either way)."""
    Btot, T, Din = x_btd.shape
    H = params["lstm"][0]["whh"].shape[0]
    num_layers = len(params["lstm"])
    out_dim = params["w_out"].shape[1]

    BT = _choose_batch_tile(Btot, T, Din, H, num_layers,
                            target=target_batch_tile,
                            scratch_budget=24 * 1024 * 1024)
    num_tiles = -(-Btot // BT)
    Bp = num_tiles * BT

    # Host-side layout prep (tiny, fused by XLA): pad batch to aligned tiles and lay each
    # tile out time-major so every in-kernel access is an aligned (BT, lanes) block.
    x_p = jnp.pad(x_btd.astype(jnp.bfloat16), ((0, Bp - Btot), (0, 0), (0, 0)))
    x_k = (x_p.reshape(num_tiles, BT, T, Din)
               .transpose(0, 2, 1, 3)
               .reshape(num_tiles, T * BT, Din))

    in_arrays = [x_k]
    in_specs = [pl.BlockSpec((1, T * BT, Din), lambda i: (i, 0, 0))]
    for layer in params["lstm"]:
        for name in ("wih", "whh", "b"):
            in_arrays.append(layer[name])
            in_specs.append(_full_spec(layer[name]))
    for name in ("bn_scale", "bn_shift", "w_out", "b_out"):
        in_arrays.append(params[name])
        in_specs.append(_full_spec(params[name]))

    # Fully unroll short recurrences; partial unroll keeps LLO visibility for long T.
    unroll = True if T <= 32 else 8
    kernel = _make_fused_kernel(num_layers, T, BT, H, unroll)

    n_gx = 2 if num_layers > 1 else 1
    vmem_est = _vmem_bytes_estimate(T, BT, Din, H, num_layers, out_dim)
    vmem_limit = int(min(64 * 1024 * 1024, max(32 * 1024 * 1024, 2 * vmem_est)))

    out = pl.pallas_call(
        kernel,
        out_shape=jax.ShapeDtypeStruct((Bp, out_dim), jnp.float32),
        grid_spec=pltpu.PrefetchScalarGridSpec(
            num_scalar_prefetch=0,
            grid=(num_tiles,),
            in_specs=in_specs,
            out_specs=pl.BlockSpec((BT, out_dim), lambda i: (i, 0)),
            scratch_shapes=[pltpu.VMEM((T * BT, 4 * H), jnp.float32)
                            for _ in range(n_gx)],
        ),
        compiler_params=pltpu.CompilerParams(
            dimension_semantics=("parallel",),              # batch tiles -> both TCs on v7x
            vmem_limit_bytes=vmem_limit,
        ),
    )(*in_arrays)
    return out[:Btot]


def siamese_lstm_forward(anchor, positive, negative, params):
    """Stack the three branches and run one fused embedding over (3B, T, D)."""
    B = anchor.shape[0]
    stacked = jnp.concatenate([anchor, positive, negative], axis=0)
    emb = embedding(stacked, params)
    return emb[:B], emb[B:2 * B], emb[2 * B:3 * B]


# ----------------------------------------------------------------------------
# Deterministic parameter construction (mirrors nn.LSTM / BatchNorm1d / Linear)
# ----------------------------------------------------------------------------
def _reorder_gates_ifog(w_4h_first):
    """Reorder PyTorch gate blocks [i, f, g, o] -> [i, f, o, g] along the leading 4H axis."""
    H = w_4h_first.shape[0] // 4
    i, f, g, o = jnp.split(w_4h_first, 4, axis=0)
    return jnp.concatenate([i, f, o, g], axis=0)


def init_params(key, input_size, hidden_size, layer_num, out_features=128, eps=1e-5):
    params = {"lstm": []}
    H = hidden_size
    scale = 1.0 / jnp.sqrt(jnp.float32(H))
    for layer in range(layer_num):
        d_in = input_size if layer == 0 else H
        key, k1, k2, k3, k4 = jax.random.split(key, 5)
        w_ih = jax.random.uniform(k1, (4 * H, d_in), jnp.float32, -scale, scale)
        w_hh = jax.random.uniform(k2, (4 * H, H), jnp.float32, -scale, scale)
        b_ih = jax.random.uniform(k3, (4 * H,), jnp.float32, -scale, scale)
        b_hh = jax.random.uniform(k4, (4 * H,), jnp.float32, -scale, scale)
        w_ih = _reorder_gates_ifog(w_ih)
        w_hh = _reorder_gates_ifog(w_hh)
        b = _reorder_gates_ifog((b_ih + b_hh)[:, None])[:, 0]
        params["lstm"].append({
            "wih": w_ih.T.astype(jnp.bfloat16),            # (d_in, 4H) MXU operand
            "whh": w_hh.T.astype(jnp.bfloat16),            # (H, 4H)    MXU operand
            "b": b.reshape(1, 4 * H),                      # (1, 4H)    f32
        })
    # BatchNorm1d(hidden_size) eval-mode stats (gamma=1, beta=0, mean=0, var=1), pre-folded.
    gamma = jnp.ones((1, H), jnp.float32)
    beta = jnp.zeros((1, H), jnp.float32)
    mean = jnp.zeros((1, H), jnp.float32)
    var = jnp.ones((1, H), jnp.float32)
    bn_scale = gamma * lax.rsqrt(var + eps)
    params["bn_scale"] = bn_scale
    params["bn_shift"] = beta - mean * bn_scale
    # Linear(hidden_size, 128)
    key, k5, k6 = jax.random.split(key, 3)
    lin_scale = 1.0 / jnp.sqrt(jnp.float32(H))
    w_out = jax.random.uniform(k5, (out_features, H), jnp.float32, -lin_scale, lin_scale)
    b_out = jax.random.uniform(k6, (out_features,), jnp.float32, -lin_scale, lin_scale)
    params["w_out"] = w_out.T.astype(jnp.bfloat16)          # (H, 128)
    params["b_out"] = b_out.reshape(1, out_features)        # (1, 128) f32
    return params


# ----------------------------------------------------------------------------
if __name__ == "__main__":
    # Small, module-consistent shapes: batch=2, seq=8, input_size=16, hidden=32, layers=2.
    B, T, INPUT_SIZE, HIDDEN, LAYERS = 2, 8, 16, 32, 2

    key = jax.random.PRNGKey(0)
    key, ka, kp, kn, kparams = jax.random.split(key, 5)
    anchor = jax.random.normal(ka, (B, T, INPUT_SIZE), jnp.float32)
    positive = jax.random.normal(kp, (B, T, INPUT_SIZE), jnp.float32)
    negative = jax.random.normal(kn, (B, T, INPUT_SIZE), jnp.float32)

    params = init_params(kparams, INPUT_SIZE, HIDDEN, LAYERS)

    fwd = jax.jit(siamese_lstm_forward)
    emb_a, emb_p, emb_n = fwd(anchor, positive, negative, params)
    jax.block_until_ready((emb_a, emb_p, emb_n))

    assert emb_a.shape == (B, 128) and emb_p.shape == (B, 128) and emb_n.shape == (B, 128)
    assert bool(jnp.all(jnp.isfinite(emb_a)))
    assert bool(jnp.all(jnp.isfinite(emb_p)))
    assert bool(jnp.all(jnp.isfinite(emb_n)))
    print("KERNEL_OK")
</pallas_src>

<mosaic_0001>
module attributes {stable_mosaic.version = 11 : i64} {
  func.func @kernel(%arg0: i32, %arg1: memref<1x128x16xbf16, #tpu.memory_space<vmem>>, %arg2: memref<16x128xbf16, #tpu.memory_space<vmem>>, %arg3: memref<32x128xbf16, #tpu.memory_space<vmem>>, %arg4: memref<1x128xf32, #tpu.memory_space<vmem>>, %arg5: memref<32x128xbf16, #tpu.memory_space<vmem>>, %arg6: memref<32x128xbf16, #tpu.memory_space<vmem>>, %arg7: memref<1x128xf32, #tpu.memory_space<vmem>>, %arg8: memref<1x32xf32, #tpu.memory_space<vmem>>, %arg9: memref<1x32xf32, #tpu.memory_space<vmem>>, %arg10: memref<32x128xbf16, #tpu.memory_space<vmem>>, %arg11: memref<1x128xf32, #tpu.memory_space<vmem>>, %arg12: memref<16x128xf32, #tpu.memory_space<vmem>>, %arg13: memref<128x128xf32, #tpu.memory_space<vmem>>, %arg14: memref<128x128xf32, #tpu.memory_space<vmem>>) attributes {dimension_semantics = [#tpu.dimension_semantics<parallel>], iteration_bounds = array<i64: 1>, scalar_prefetch = 0 : i64, scratch_operands = 2 : i64, tpu.core_type = #tpu.core_type<tc>, window_params = [{transform_indices = @transform_0, window_bounds = array<i64: 1, 128, 16>}, {pipeline_mode = #tpu.pipeline_mode<synchronous>, transform_indices = @transform_1, window_bounds = array<i64: 16, 128>}, {pipeline_mode = #tpu.pipeline_mode<synchronous>, transform_indices = @transform_2, window_bounds = array<i64: 32, 128>}, {pipeline_mode = #tpu.pipeline_mode<synchronous>, transform_indices = @transform_3, window_bounds = array<i64: 1, 128>}, {pipeline_mode = #tpu.pipeline_mode<synchronous>, transform_indices = @transform_4, window_bounds = array<i64: 32, 128>}, {pipeline_mode = #tpu.pipeline_mode<synchronous>, transform_indices = @transform_5, window_bounds = array<i64: 32, 128>}, {pipeline_mode = #tpu.pipeline_mode<synchronous>, transform_indices = @transform_6, window_bounds = array<i64: 1, 128>}, {pipeline_mode = #tpu.pipeline_mode<synchronous>, transform_indices = @transform_7, window_bounds = array<i64: 1, 32>}, {pipeline_mode = #tpu.pipeline_mode<synchronous>, transform_indices = @transform_8, window_bounds = array<i64: 1, 32>}, {pipeline_mode = #tpu.pipeline_mode<synchronous>, transform_indices = @transform_9, window_bounds = array<i64: 32, 128>}, {pipeline_mode = #tpu.pipeline_mode<synchronous>, transform_indices = @transform_10, window_bounds = array<i64: 1, 128>}, {transform_indices = @transform_11, window_bounds = array<i64: 16, 128>}]} {
    %c0 = arith.constant 0 : index
    %c0_0 = arith.constant 0 : index
    %c0_1 = arith.constant 0 : index
    %0 = vector.load %arg1[%c0, %c0_0, %c0_1] : memref<1x128x16xbf16, #tpu.memory_space<vmem>>, vector<1x128x16xbf16>
    %1 = vector.shape_cast %0 : vector<1x128x16xbf16> to vector<128x16xbf16>
    %c0_2 = arith.constant 0 : index
    %c0_3 = arith.constant 0 : index
    %2 = vector.load %arg2[%c0_2, %c0_3] : memref<16x128xbf16, #tpu.memory_space<vmem>>, vector<16x128xbf16>
    %cst = arith.constant dense<0.000000e+00> : vector<128x128xf32>
    %3 = tpu.matmul %1, %2, %cst {dimension_numbers = #tpu.dot_dimension_numbers<[1], [0], [0], [1], [0, 0, 1, 1], [], []>} : vector<128x16xbf16>, vector<16x128xbf16>, vector<128x128xf32> -> vector<128x128xf32>
    %c0_4 = arith.constant 0 : index
    %c0_5 = arith.constant 0 : index
    %4 = vector.load %arg13[%c0_4, %c0_5] : memref<128x128xf32, #tpu.memory_space<vmem>>, vector<128x128xf32>
    tpu.vector_store %arg13[%c0_4, %c0_5], %3 {strides = array<i32>} : memref<128x128xf32, #tpu.memory_space<vmem>>, vector<128x128xf32>,
    %c0_6 = arith.constant 0 : index
    %c0_7 = arith.constant 0 : index
    %5 = vector.load %arg5[%c0_6, %c0_7] : memref<32x128xbf16, #tpu.memory_space<vmem>>, vector<32x128xbf16>
    %c0_8 = arith.constant 0 : index
    %c0_9 = arith.constant 0 : index
    %6 = vector.load %arg3[%c0_8, %c0_9] : memref<32x128xbf16, #tpu.memory_space<vmem>>, vector<32x128xbf16>
    %c0_10 = arith.constant 0 : index
    %c0_11 = arith.constant 0 : index
    %7 = vector.load %arg4[%c0_10, %c0_11] : memref<1x128xf32, #tpu.memory_space<vmem>>, vector<1x128xf32>
    %cst_12 = arith.constant 0.000000e+00 : f32
    %8 = vector.broadcast %cst_12 : f32 to vector<16x32xf32>
    %cst_13 = arith.constant 0.000000e+00 : f32
    %9 = vector.broadcast %cst_13 : f32 to vector<16x32xf32>
    %c0_i32 = arith.constant 0 : i32
    %c16_i32 = arith.constant 16 : i32
    %10 = arith.muli %c0_i32, %c16_i32 : i32
    %11 = tpu.assume_multiple %10, 16 : i32
    %12 = arith.index_cast %11 : i32 to index
    %c0_14 = arith.constant 0 : index
    %13 = vector.load %arg13[%12, %c0_14] : memref<128x128xf32, #tpu.memory_space<vmem>>, vector<16x128xf32>
    %14 = vector.broadcast %7 : vector<1x128xf32> to vector<16x128xf32>
    %15 = arith.addf %13, %14 : vector<16x128xf32>
    %16 = arith.truncf %8 : vector<16x32xf32> to vector<16x32xbf16>
    %cst_15 = arith.constant dense<0.000000e+00> : vector<16x128xf32>
    %17 = tpu.matmul %16, %6, %cst_15 {dimension_numbers = #tpu.dot_dimension_numbers<[1], [0], [0], [1], [0, 0, 1, 1], [], []>} : vector<16x32xbf16>, vector<32x128xbf16>, vector<16x128xf32> -> vector<16x128xf32>
    %18 = arith.addf %15, %17 : vector<16x128xf32>
    %19 = vector.extract_strided_slice %18 {offsets = [0, 0], sizes = [16, 96], strides = [1, 1]} : vector<16x128xf32> to vector<16x96xf32>
    %20 = arith.negf %19 : vector<16x96xf32>
    %21 = math.exp %20 : vector<16x96xf32>
    %cst_16 = arith.constant 1.000000e+00 : f32
    %22 = vector.broadcast %cst_16 : f32 to vector<16x96xf32>
    %23 = arith.addf %22, %21 : vector<16x96xf32>
    %24 = arith.divf %22, %23 : vector<16x96xf32>
    %25 = vector.extract_strided_slice %18 {offsets = [0, 96], sizes = [16, 32], strides = [1, 1]} : vector<16x128xf32> to vector<16x32xf32>
    %26 = math.tanh %25 : vector<16x32xf32>
    %27 = vector.extract_strided_slice %24 {offsets = [0, 0], sizes = [16, 32], strides = [1, 1]} : vector<16x96xf32> to vector<16x32xf32>
    %28 = vector.extract_strided_slice %24 {offsets = [0, 32], sizes = [16, 32], strides = [1, 1]} : vector<16x96xf32> to vector<16x32xf32>
    %29 = vector.extract_strided_slice %24 {offsets = [0, 64], sizes = [16, 32], strides = [1, 1]} : vector<16x96xf32> to vector<16x32xf32>
    %30 = arith.mulf %28, %9 : vector<16x32xf32>
    %31 = arith.mulf %27, %26 : vector<16x32xf32>
    %32 = arith.addf %30, %31 : vector<16x32xf32>
    %33 = math.tanh %32 : vector<16x32xf32>
    %34 = arith.mulf %29, %33 : vector<16x32xf32>
    %35 = arith.truncf %34 : vector<16x32xf32> to vector<16x32xbf16>
    %cst_17 = arith.constant dense<0.000000e+00> : vector<16x128xf32>
    %36 = tpu.matmul %35, %5, %cst_17 {dimension_numbers = #tpu.dot_dimension_numbers<[1], [0], [0], [1], [0, 0, 1, 1], [], []>} : vector<16x32xbf16>, vector<32x128xbf16>, vector<16x128xf32> -> vector<16x128xf32>
    %37 = arith.index_cast %11 : i32 to index
    %c0_18 = arith.constant 0 : index
    %38 = vector.load %arg14[%37, %c0_18] : memref<128x128xf32, #tpu.memory_space<vmem>>, vector<16x128xf32>
    tpu.vector_store %arg14[%37, %c0_18], %36 {strides = array<i32>} : memref<128x128xf32, #tpu.memory_space<vmem>>, vector<16x128xf32>,
    %c1_i32 = arith.constant 1 : i32
    %c16_i32_19 = arith.constant 16 : i32
    %39 = arith.muli %c1_i32, %c16_i32_19 : i32
    %40 = tpu.assume_multiple %39, 16 : i32
    %41 = arith.index_cast %40 : i32 to index
    %c0_20 = arith.constant 0 : index
    %42 = vector.load %arg13[%41, %c0_20] : memref<128x128xf32, #tpu.memory_space<vmem>>, vector<16x128xf32>
    %43 = vector.broadcast %7 : vector<1x128xf32> to vector<16x128xf32>
    %44 = arith.addf %42, %43 : vector<16x128xf32>
    %45 = arith.truncf %34 : vector<16x32xf32> to vector<16x32xbf16>
    %cst_21 = arith.constant dense<0.000000e+00> : vector<16x128xf32>
    %46 = tpu.matmul %45, %6, %cst_21 {dimension_numbers = #tpu.dot_dimension_numbers<[1], [0], [0], [1], [0, 0, 1, 1], [], []>} : vector<16x32xbf16>, vector<32x128xbf16>, vector<16x128xf32> -> vector<16x128xf32>
    %47 = arith.addf %44, %46 : vector<16x128xf32>
    %48 = vector.extract_strided_slice %47 {offsets = [0, 0], sizes = [16, 96], strides = [1, 1]} : vector<16x128xf32> to vector<16x96xf32>
    %49 = arith.negf %48 : vector<16x96xf32>
    %50 = math.exp %49 : vector<16x96xf32>
    %cst_22 = arith.constant 1.000000e+00 : f32
    %51 = vector.broadcast %cst_22 : f32 to vector<16x96xf32>
    %52 = arith.addf %51, %50 : vector<16x96xf32>
    %53 = arith.divf %51, %52 : vector<16x96xf32>
    %54 = vector.extract_strided_slice %47 {offsets = [0, 96], sizes = [16, 32], strides = [1, 1]} : vector<16x128xf32> to vector<16x32xf32>
    %55 = math.tanh %54 : vector<16x32xf32>
    %56 = vector.extract_strided_slice %53 {offsets = [0, 0], sizes = [16, 32], strides = [1, 1]} : vector<16x96xf32> to vector<16x32xf32>
    %57 = vector.extract_strided_slice %53 {offsets = [0, 32], sizes = [16, 32], strides = [1, 1]} : vector<16x96xf32> to vector<16x32xf32>
    %58 = vector.extract_strided_slice %53 {offsets = [0, 64], sizes = [16, 32], strides = [1, 1]} : vector<16x96xf32> to vector<16x32xf32>
    %59 = arith.mulf %57, %32 : vector<16x32xf32>
    %60 = arith.mulf %56, %55 : vector<16x32xf32>
    %61 = arith.addf %59, %60 : vector<16x32xf32>
    %62 = math.tanh %61 : vector<16x32xf32>
    %63 = arith.mulf %58, %62 : vector<16x32xf32>
    %64 = arith.truncf %63 : vector<16x32xf32> to vector<16x32xbf16>
    %cst_23 = arith.constant dense<0.000000e+00> : vector<16x128xf32>
    %65 = tpu.matmul %64, %5, %cst_23 {dimension_numbers = #tpu.dot_dimension_numbers<[1], [0], [0], [1], [0, 0, 1, 1], [], []>} : vector<16x32xbf16>, vector<32x128xbf16>, vector<16x128xf32> -> vector<16x128xf32>
    %66 = arith.index_cast %40 : i32 to index
    %c0_24 = arith.constant 0 : index
    %67 = vector.load %arg14[%66, %c0_24] : memref<128x128xf32, #tpu.memory_space<vmem>>, vector<16x128xf32>
    tpu.vector_store %arg14[%66, %c0_24], %65 {strides = array<i32>} : memref<128x128xf32, #tpu.memory_space<vmem>>, vector<16x128xf32>,
    %c2_i32 = arith.constant 2 : i32
    %c16_i32_25 = arith.constant 16 : i32
    %68 = arith.muli %c2_i32, %c16_i32_25 : i32
    %69 = tpu.assume_multiple %68, 16 : i32
    %70 = arith.index_cast %69 : i32 to index
    %c0_26 = arith.constant 0 : index
    %71 = vector.load %arg13[%70, %c0_26] : memref<128x128xf32, #tpu.memory_space<vmem>>, vector<16x128xf32>
    %72 = vector.broadcast %7 : vector<1x128xf32> to vector<16x128xf32>
    %73 = arith.addf %71, %72 : vector<16x128xf32>
    %74 = arith.truncf %63 : vector<16x32xf32> to vector<16x32xbf16>
    %cst_27 = arith.constant dense<0.000000e+00> : vector<16x128xf32>
    %75 = tpu.matmul %74, %6, %cst_27 {dimension_numbers = #tpu.dot_dimension_numbers<[1], [0], [0], [1], [0, 0, 1, 1], [], []>} : vector<16x32xbf16>, vector<32x128xbf16>, vector<16x128xf32> -> vector<16x128xf32>
    %76 = arith.addf %73, %75 : vector<16x128xf32>
    %77 = vector.extract_strided_slice %76 {offsets = [0, 0], sizes = [16, 96], strides = [1, 1]} : vector<16x128xf32> to vector<16x96xf32>
    %78 = arith.negf %77 : vector<16x96xf32>
    %79 = math.exp %78 : vector<16x96xf32>
    %cst_28 = arith.constant 1.000000e+00 : f32
    %80 = vector.broadcast %cst_28 : f32 to vector<16x96xf32>
    %81 = arith.addf %80, %79 : vector<16x96xf32>
    %82 = arith.divf %80, %81 : vector<16x96xf32>
    %83 = vector.extract_strided_slice %76 {offsets = [0, 96], sizes = [16, 32], strides = [1, 1]} : vector<16x128xf32> to vector<16x32xf32>
    %84 = math.tanh %83 : vector<16x32xf32>
    %85 = vector.extract_strided_slice %82 {offsets = [0, 0], sizes = [16, 32], strides = [1, 1]} : vector<16x96xf32> to vector<16x32xf32>
    %86 = vector.extract_strided_slice %82 {offsets = [0, 32], sizes = [16, 32], strides = [1, 1]} : vector<16x96xf32> to vector<16x32xf32>
    %87 = vector.extract_strided_slice %82 {offsets = [0, 64], sizes = [16, 32], strides = [1, 1]} : vector<16x96xf32> to vector<16x32xf32>
    %88 = arith.mulf %86, %61 : vector<16x32xf32>
    %89 = arith.mulf %85, %84 : vector<16x32xf32>
    %90 = arith.addf %88, %89 : vector<16x32xf32>
    %91 = math.tanh %90 : vector<16x32xf32>
    %92 = arith.mulf %87, %91 : vector<16x32xf32>
    %93 = arith.truncf %92 : vector<16x32xf32> to vector<16x32xbf16>
    %cst_29 = arith.constant dense<0.000000e+00> : vector<16x128xf32>
    %94 = tpu.matmul %93, %5, %cst_29 {dimension_numbers = #tpu.dot_dimension_numbers<[1], [0], [0], [1], [0, 0, 1, 1], [], []>} : vector<16x32xbf16>, vector<32x128xbf16>, vector<16x128xf32> -> vector<16x128xf32>
    %95 = arith.index_cast %69 : i32 to index
    %c0_30 = arith.constant 0 : index
    %96 = vector.load %arg14[%95, %c0_30] : memref<128x128xf32, #tpu.memory_space<vmem>>, vector<16x128xf32>
    tpu.vector_store %arg14[%95, %c0_30], %94 {strides = array<i32>} : memref<128x128xf32, #tpu.memory_space<vmem>>, vector<16x128xf32>,
    %c3_i32 = arith.constant 3 : i32
    %c16_i32_31 = arith.constant 16 : i32
    %97 = arith.muli %c3_i32, %c16_i32_31 : i32
    %98 = tpu.assume_multiple %97, 16 : i32
    %99 = arith.index_cast %98 : i32 to index
    %c0_32 = arith.constant 0 : index
    %100 = vector.load %arg13[%99, %c0_32] : memref<128x128xf32, #tpu.memory_space<vmem>>, vector<16x128xf32>
    %101 = vector.broadcast %7 : vector<1x128xf32> to vector<16x128xf32>
    %102 = arith.addf %100, %101 : vector<16x128xf32>
    %103 = arith.truncf %92 : vector<16x32xf32> to vector<16x32xbf16>
    %cst_33 = arith.constant dense<0.000000e+00> : vector<16x128xf32>
    %104 = tpu.matmul %103, %6, %cst_33 {dimension_numbers = #tpu.dot_dimension_numbers<[1], [0], [0], [1], [0, 0, 1, 1], [], []>} : vector<16x32xbf16>, vector<32x128xbf16>, vector<16x128xf32> -> vector<16x128xf32>
    %105 = arith.addf %102, %104 : vector<16x128xf32>
    %106 = vector.extract_strided_slice %105 {offsets = [0, 0], sizes = [16, 96], strides = [1, 1]} : vector<16x128xf32> to vector<16x96xf32>
    %107 = arith.negf %106 : vector<16x96xf32>
    %108 = math.exp %107 : vector<16x96xf32>
    %cst_34 = arith.constant 1.000000e+00 : f32
    %109 = vector.broadcast %cst_34 : f32 to vector<16x96xf32>
    %110 = arith.addf %109, %108 : vector<16x96xf32>
    %111 = arith.divf %109, %110 : vector<16x96xf32>
    %112 = vector.extract_strided_slice %105 {offsets = [0, 96], sizes = [16, 32], strides = [1, 1]} : vector<16x128xf32> to vector<16x32xf32>
    %113 = math.tanh %112 : vector<16x32xf32>
    %114 = vector.extract_strided_slice %111 {offsets = [0, 0], sizes = [16, 32], strides = [1, 1]} : vector<16x96xf32> to vector<16x32xf32>
    %115 = vector.extract_strided_slice %111 {offsets = [0, 32], sizes = [16, 32], strides = [1, 1]} : vector<16x96xf32> to vector<16x32xf32>
    %116 = vector.extract_strided_slice %111 {offsets = [0, 64], sizes = [16, 32], strides = [1, 1]} : vector<16x96xf32> to vector<16x32xf32>
    %117 = arith.mulf %115, %90 : vector<16x32xf32>
    %118 = arith.mulf %114, %113 : vector<16x32xf32>
    %119 = arith.addf %117, %118 : vector<16x32xf32>
    %120 = math.tanh %119 : vector<16x32xf32>
    %121 = arith.mulf %116, %120 : vector<16x32xf32>
    %122 = arith.truncf %121 : vector<16x32xf32> to vector<16x32xbf16>
    %cst_35 = arith.constant dense<0.000000e+00> : vector<16x128xf32>
    %123 = tpu.matmul %122, %5, %cst_35 {dimension_numbers = #tpu.dot_dimension_numbers<[1], [0], [0], [1], [0, 0, 1, 1], [], []>} : vector<16x32xbf16>, vector<32x128xbf16>, vector<16x128xf32> -> vector<16x128xf32>
    %124 = arith.index_cast %98 : i32 to index
    %c0_36 = arith.constant 0 : index
    %125 = vector.load %arg14[%124, %c0_36] : memref<128x128xf32, #tpu.memory_space<vmem>>, vector<16x128xf32>
    tpu.vector_store %arg14[%124, %c0_36], %123 {strides = array<i32>} : memref<128x128xf32, #tpu.memory_space<vmem>>, vector<16x128xf32>,
    %c4_i32 = arith.constant 4 : i32
    %c16_i32_37 = arith.constant 16 : i32
    %126 = arith.muli %c4_i32, %c16_i32_37 : i32
    %127 = tpu.assume_multiple %126, 16 : i32
    %128 = arith.index_cast %127 : i32 to index
    %c0_38 = arith.constant 0 : index
    %129 = vector.load %arg13[%128, %c0_38] : memref<128x128xf32, #tpu.memory_space<vmem>>, vector<16x128xf32>
    %130 = vector.broadcast %7 : vector<1x128xf32> to vector<16x128xf32>
    %131 = arith.addf %129, %130 : vector<16x128xf32>
    %132 = arith.truncf %121 : vector<16x32xf32> to vector<16x32xbf16>
    %cst_39 = arith.constant dense<0.000000e+00> : vector<16x128xf32>
    %133 = tpu.matmul %132, %6, %cst_39 {dimension_numbers = #tpu.dot_dimension_numbers<[1], [0], [0], [1], [0, 0, 1, 1], [], []>} : vector<16x32xbf16>, vector<32x128xbf16>, vector<16x128xf32> -> vector<16x128xf32>
    %134 = arith.addf %131, %133 : vector<16x128xf32>
    %135 = vector.extract_strided_slice %134 {offsets = [0, 0], sizes = [16, 96], strides = [1, 1]} : vector<16x128xf32> to vector<16x96xf32>
    %136 = arith.negf %135 : vector<16x96xf32>
    %137 = math.exp %136 : vector<16x96xf32>
    %cst_40 = arith.constant 1.000000e+00 : f32
    %138 = vector.broadcast %cst_40 : f32 to vector<16x96xf32>
    %139 = arith.addf %138, %137 : vector<16x96xf32>
    %140 = arith.divf %138, %139 : vector<16x96xf32>
    %141 = vector.extract_strided_slice %134 {offsets = [0, 96], sizes = [16, 32], strides = [1, 1]} : vector<16x128xf32> to vector<16x32xf32>
    %142 = math.tanh %141 : vector<16x32xf32>
    %143 = vector.extract_strided_slice %140 {offsets = [0, 0], sizes = [16, 32], strides = [1, 1]} : vector<16x96xf32> to vector<16x32xf32>
    %144 = vector.extract_strided_slice %140 {offsets = [0, 32], sizes = [16, 32], strides = [1, 1]} : vector<16x96xf32> to vector<16x32xf32>
    %145 = vector.extract_strided_slice %140 {offsets = [0, 64], sizes = [16, 32], strides = [1, 1]} : vector<16x96xf32> to vector<16x32xf32>
    %146 = arith.mulf %144, %119 : vector<16x32xf32>
    %147 = arith.mulf %143, %142 : vector<16x32xf32>
    %148 = arith.addf %146, %147 : vector<16x32xf32>
    %149 = math.tanh %148 : vector<16x32xf32>
    %150 = arith.mulf %145, %149 : vector<16x32xf32>
    %151 = arith.truncf %150 : vector<16x32xf32> to vector<16x32xbf16>
    %cst_41 = arith.constant dense<0.000000e+00> : vector<16x128xf32>
    %152 = tpu.matmul %151, %5, %cst_41 {dimension_numbers = #tpu.dot_dimension_numbers<[1], [0], [0], [1], [0, 0, 1, 1], [], []>} : vector<16x32xbf16>, vector<32x128xbf16>, vector<16x128xf32> -> vector<16x128xf32>
    %153 = arith.index_cast %127 : i32 to index
    %c0_42 = arith.constant 0 : index
    %154 = vector.load %arg14[%153, %c0_42] : memref<128x128xf32, #tpu.memory_space<vmem>>, vector<16x128xf32>
    tpu.vector_store %arg14[%153, %c0_42], %152 {strides = array<i32>} : memref<128x128xf32, #tpu.memory_space<vmem>>, vector<16x128xf32>,
    %c5_i32 = arith.constant 5 : i32
    %c16_i32_43 = arith.constant 16 : i32
    %155 = arith.muli %c5_i32, %c16_i32_43 : i32
    %156 = tpu.assume_multiple %155, 16 : i32
    %157 = arith.index_cast %156 : i32 to index
    %c0_44 = arith.constant 0 : index
    %158 = vector.load %arg13[%157, %c0_44] : memref<128x128xf32, #tpu.memory_space<vmem>>, vector<16x128xf32>
    %159 = vector.broadcast %7 : vector<1x128xf32> to vector<16x128xf32>
    %160 = arith.addf %158, %159 : vector<16x128xf32>
    %161 = arith.truncf %150 : vector<16x32xf32> to vector<16x32xbf16>
    %cst_45 = arith.constant dense<0.000000e+00> : vector<16x128xf32>
    %162 = tpu.matmul %161, %6, %cst_45 {dimension_numbers = #tpu.dot_dimension_numbers<[1], [0], [0], [1], [0, 0, 1, 1], [], []>} : vector<16x32xbf16>, vector<32x128xbf16>, vector<16x128xf32> -> vector<16x128xf32>
    %163 = arith.addf %160, %162 : vector<16x128xf32>
    %164 = vector.extract_strided_slice %163 {offsets = [0, 0], sizes = [16, 96], strides = [1, 1]} : vector<16x128xf32> to vector<16x96xf32>
    %165 = arith.negf %164 : vector<16x96xf32>
    %166 = math.exp %165 : vector<16x96xf32>
    %cst_46 = arith.constant 1.000000e+00 : f32
    %167 = vector.broadcast %cst_46 : f32 to vector<16x96xf32>
    %168 = arith.addf %167, %166 : vector<16x96xf32>
    %169 = arith.divf %167, %168 : vector<16x96xf32>
    %170 = vector.extract_strided_slice %163 {offsets = [0, 96], sizes = [16, 32], strides = [1, 1]} : vector<16x128xf32> to vector<16x32xf32>
    %171 = math.tanh %170 : vector<16x32xf32>
    %172 = vector.extract_strided_slice %169 {offsets = [0, 0], sizes = [16, 32], strides = [1, 1]} : vector<16x96xf32> to vector<16x32xf32>
    %173 = vector.extract_strided_slice %169 {offsets = [0, 32], sizes = [16, 32], strides = [1, 1]} : vector<16x96xf32> to vector<16x32xf32>
    %174 = vector.extract_strided_slice %169 {offsets = [0, 64], sizes = [16, 32], strides = [1, 1]} : vector<16x96xf32> to vector<16x32xf32>
    %175 = arith.mulf %173, %148 : vector<16x32xf32>
    %176 = arith.mulf %172, %171 : vector<16x32xf32>
    %177 = arith.addf %175, %176 : vector<16x32xf32>
    %178 = math.tanh %177 : vector<16x32xf32>
    %179 = arith.mulf %174, %178 : vector<16x32xf32>
    %180 = arith.truncf %179 : vector<16x32xf32> to vector<16x32xbf16>
    %cst_47 = arith.constant dense<0.000000e+00> : vector<16x128xf32>
    %181 = tpu.matmul %180, %5, %cst_47 {dimension_numbers = #tpu.dot_dimension_numbers<[1], [0], [0], [1], [0, 0, 1, 1], [], []>} : vector<16x32xbf16>, vector<32x128xbf16>, vector<16x128xf32> -> vector<16x128xf32>
    %182 = arith.index_cast %156 : i32 to index
    %c0_48 = arith.constant 0 : index
    %183 = vector.load %arg14[%182, %c0_48] : memref<128x128xf32, #tpu.memory_space<vmem>>, vector<16x128xf32>
    tpu.vector_store %arg14[%182, %c0_48], %181 {strides = array<i32>} : memref<128x128xf32, #tpu.memory_space<vmem>>, vector<16x128xf32>,
    %c6_i32 = arith.constant 6 : i32
    %c16_i32_49 = arith.constant 16 : i32
    %184 = arith.muli %c6_i32, %c16_i32_49 : i32
    %185 = tpu.assume_multiple %184, 16 : i32
    %186 = arith.index_cast %185 : i32 to index
    %c0_50 = arith.constant 0 : index
    %187 = vector.load %arg13[%186, %c0_50] : memref<128x128xf32, #tpu.memory_space<vmem>>, vector<16x128xf32>
    %188 = vector.broadcast %7 : vector<1x128xf32> to vector<16x128xf32>
    %189 = arith.addf %187, %188 : vector<16x128xf32>
    %190 = arith.truncf %179 : vector<16x32xf32> to vector<16x32xbf16>
    %cst_51 = arith.constant dense<0.000000e+00> : vector<16x128xf32>
    %191 = tpu.matmul %190, %6, %cst_51 {dimension_numbers = #tpu.dot_dimension_numbers<[1], [0], [0], [1], [0, 0, 1, 1], [], []>} : vector<16x32xbf16>, vector<32x128xbf16>, vector<16x128xf32> -> vector<16x128xf32>
    %192 = arith.addf %189, %191 : vector<16x128xf32>
    %193 = vector.extract_strided_slice %192 {offsets = [0, 0], sizes = [16, 96], strides = [1, 1]} : vector<16x128xf32> to vector<16x96xf32>
    %194 = arith.negf %193 : vector<16x96xf32>
    %195 = math.exp %194 : vector<16x96xf32>
    %cst_52 = arith.constant 1.000000e+00 : f32
    %196 = vector.broadcast %cst_52 : f32 to vector<16x96xf32>
    %197 = arith.addf %196, %195 : vector<16x96xf32>
    %198 = arith.divf %196, %197 : vector<16x96xf32>
    %199 = vector.extract_strided_slice %192 {offsets = [0, 96], sizes = [16, 32], strides = [1, 1]} : vector<16x128xf32> to vector<16x32xf32>
    %200 = math.tanh %199 : vector<16x32xf32>
    %201 = vector.extract_strided_slice %198 {offsets = [0, 0], sizes = [16, 32], strides = [1, 1]} : vector<16x96xf32> to vector<16x32xf32>
    %202 = vector.extract_strided_slice %198 {offsets = [0, 32], sizes = [16, 32], strides = [1, 1]} : vector<16x96xf32> to vector<16x32xf32>
    %203 = vector.extract_strided_slice %198 {offsets = [0, 64], sizes = [16, 32], strides = [1, 1]} : vector<16x96xf32> to vector<16x32xf32>
    %204 = arith.mulf %202, %177 : vector<16x32xf32>
    %205 = arith.mulf %201, %200 : vector<16x32xf32>
    %206 = arith.addf %204, %205 : vector<16x32xf32>
    %207 = math.tanh %206 : vector<16x32xf32>
    %208 = arith.mulf %203, %207 : vector<16x32xf32>
    %209 = arith.truncf %208 : vector<16x32xf32> to vector<16x32xbf16>
    %cst_53 = arith.constant dense<0.000000e+00> : vector<16x128xf32>
    %210 = tpu.matmul %209, %5, %cst_53 {dimension_numbers = #tpu.dot_dimension_numbers<[1], [0], [0], [1], [0, 0, 1, 1], [], []>} : vector<16x32xbf16>, vector<32x128xbf16>, vector<16x128xf32> -> vector<16x128xf32>
    %211 = arith.index_cast %185 : i32 to index
    %c0_54 = arith.constant 0 : index
    %212 = vector.load %arg14[%211, %c0_54] : memref<128x128xf32, #tpu.memory_space<vmem>>, vector<16x128xf32>
    tpu.vector_store %arg14[%211, %c0_54], %210 {strides = array<i32>} : memref<128x128xf32, #tpu.memory_space<vmem>>, vector<16x128xf32>,
    %c7_i32 = arith.constant 7 : i32
    %c16_i32_55 = arith.constant 16 : i32
    %213 = arith.muli %c7_i32, %c16_i32_55 : i32
    %214 = tpu.assume_multiple %213, 16 : i32
    %215 = arith.index_cast %214 : i32 to index
    %c0_56 = arith.constant 0 : index
    %216 = vector.load %arg13[%215, %c0_56] : memref<128x128xf32, #tpu.memory_space<vmem>>, vector<16x128xf32>
    %217 = vector.broadcast %7 : vector<1x128xf32> to vector<16x128xf32>
    %218 = arith.addf %216, %217 : vector<16x128xf32>
    %219 = arith.truncf %208 : vector<16x32xf32> to vector<16x32xbf16>
    %cst_57 = arith.constant dense<0.000000e+00> : vector<16x128xf32>
    %220 = tpu.matmul %219, %6, %cst_57 {dimension_numbers = #tpu.dot_dimension_numbers<[1], [0], [0], [1], [0, 0, 1, 1], [], []>} : vector<16x32xbf16>, vector<32x128xbf16>, vector<16x128xf32> -> vector<16x128xf32>
    %221 = arith.addf %218, %220 : vector<16x128xf32>
    %222 = vector.extract_strided_slice %221 {offsets = [0, 0], sizes = [16, 96], strides = [1, 1]} : vector<16x128xf32> to vector<16x96xf32>
    %223 = arith.negf %222 : vector<16x96xf32>
    %224 = math.exp %223 : vector<16x96xf32>
    %cst_58 = arith.constant 1.000000e+00 : f32
    %225 = vector.broadcast %cst_58 : f32 to vector<16x96xf32>
    %226 = arith.addf %225, %224 : vector<16x96xf32>
    %227 = arith.divf %225, %226 : vector<16x96xf32>
    %228 = vector.extract_strided_slice %221 {offsets = [0, 96], sizes = [16, 32], strides = [1, 1]} : vector<16x128xf32> to vector<16x32xf32>
    %229 = math.tanh %228 : vector<16x32xf32>
    %230 = vector.extract_strided_slice %227 {offsets = [0, 0], sizes = [16, 32], strides = [1, 1]} : vector<16x96xf32> to vector<16x32xf32>
    %231 = vector.extract_strided_slice %227 {offsets = [0, 32], sizes = [16, 32], strides = [1, 1]} : vector<16x96xf32> to vector<16x32xf32>
    %232 = vector.extract_strided_slice %227 {offsets = [0, 64], sizes = [16, 32], strides = [1, 1]} : vector<16x96xf32> to vector<16x32xf32>
    %233 = arith.mulf %231, %206 : vector<16x32xf32>
    %234 = arith.mulf %230, %229 : vector<16x32xf32>
    %235 = arith.addf %233, %234 : vector<16x32xf32>
    %236 = math.tanh %235 : vector<16x32xf32>
    %237 = arith.mulf %232, %236 : vector<16x32xf32>
    %238 = arith.truncf %237 : vector<16x32xf32> to vector<16x32xbf16>
    %cst_59 = arith.constant dense<0.000000e+00> : vector<16x128xf32>
    %239 = tpu.matmul %238, %5, %cst_59 {dimension_numbers = #tpu.dot_dimension_numbers<[1], [0], [0], [1], [0, 0, 1, 1], [], []>} : vector<16x32xbf16>, vector<32x128xbf16>, vector<16x128xf32> -> vector<16x128xf32>
    %240 = arith.index_cast %214 : i32 to index
    %c0_60 = arith.constant 0 : index
    %241 = vector.load %arg14[%240, %c0_60] : memref<128x128xf32, #tpu.memory_space<vmem>>, vector<16x128xf32>
    tpu.vector_store %arg14[%240, %c0_60], %239 {strides = array<i32>} : memref<128x128xf32, #tpu.memory_space<vmem>>, vector<16x128xf32>,
    %c8_i32 = arith.constant 8 : i32
    %c0_61 = arith.constant 0 : index
    %c0_62 = arith.constant 0 : index
    %242 = vector.load %arg6[%c0_61, %c0_62] : memref<32x128xbf16, #tpu.memory_space<vmem>>, vector<32x128xbf16>
    %c0_63 = arith.constant 0 : index
    %c0_64 = arith.constant 0 : index
    %243 = vector.load %arg7[%c0_63, %c0_64] : memref<1x128xf32, #tpu.memory_space<vmem>>, vector<1x128xf32>
    %cst_65 = arith.constant 0.000000e+00 : f32
    %244 = vector.broadcast %cst_65 : f32 to vector<16x32xf32>
    %cst_66 = arith.constant 0.000000e+00 : f32
    %245 = vector.broadcast %cst_66 : f32 to vector<16x32xf32>
    %c0_i32_67 = arith.constant 0 : i32
    %c16_i32_68 = arith.constant 16 : i32
    %246 = arith.muli %c0_i32_67, %c16_i32_68 : i32
    %247 = tpu.assume_multiple %246, 16 : i32
    %248 = arith.index_cast %247 : i32 to index
    %c0_69 = arith.constant 0 : index
    %249 = vector.load %arg14[%248, %c0_69] : memref<128x128xf32, #tpu.memory_space<vmem>>, vector<16x128xf32>
    %250 = vector.broadcast %243 : vector<1x128xf32> to vector<16x128xf32>
    %251 = arith.addf %249, %250 : vector<16x128xf32>
    %252 = arith.truncf %244 : vector<16x32xf32> to vector<16x32xbf16>
    %cst_70 = arith.constant dense<0.000000e+00> : vector<16x128xf32>
    %253 = tpu.matmul %252, %242, %cst_70 {dimension_numbers = #tpu.dot_dimension_numbers<[1], [0], [0], [1], [0, 0, 1, 1], [], []>} : vector<16x32xbf16>, vector<32x128xbf16>, vector<16x128xf32> -> vector<16x128xf32>
    %254 = arith.addf %251, %253 : vector<16x128xf32>
    %255 = vector.extract_strided_slice %254 {offsets = [0, 0], sizes = [16, 96], strides = [1, 1]} : vector<16x128xf32> to vector<16x96xf32>
    %256 = arith.negf %255 : vector<16x96xf32>
    %257 = math.exp %256 : vector<16x96xf32>
    %cst_71 = arith.constant 1.000000e+00 : f32
    %258 = vector.broadcast %cst_71 : f32 to vector<16x96xf32>
    %259 = arith.addf %258, %257 : vector<16x96xf32>
    %260 = arith.divf %258, %259 : vector<16x96xf32>
    %261 = vector.extract_strided_slice %254 {offsets = [0, 96], sizes = [16, 32], strides = [1, 1]} : vector<16x128xf32> to vector<16x32xf32>
    %262 = math.tanh %261 : vector<16x32xf32>
    %263 = vector.extract_strided_slice %260 {offsets = [0, 0], sizes = [16, 32], strides = [1, 1]} : vector<16x96xf32> to vector<16x32xf32>
    %264 = vector.extract_strided_slice %260 {offsets = [0, 32], sizes = [16, 32], strides = [1, 1]} : vector<16x96xf32> to vector<16x32xf32>
    %265 = vector.extract_strided_slice %260 {offsets = [0, 64], sizes = [16, 32], strides = [1, 1]} : vector<16x96xf32> to vector<16x32xf32>
    %266 = arith.mulf %264, %245 : vector<16x32xf32>
    %267 = arith.mulf %263, %262 : vector<16x32xf32>
    %268 = arith.addf %266, %267 : vector<16x32xf32>
    %269 = math.tanh %268 : vector<16x32xf32>
    %270 = arith.mulf %265, %269 : vector<16x32xf32>
    %c1_i32_72 = arith.constant 1 : i32
    %c16_i32_73 = arith.constant 16 : i32
    %271 = arith.muli %c1_i32_72, %c16_i32_73 : i32
    %272 = tpu.assume_multiple %271, 16 : i32
    %273 = arith.index_cast %272 : i32 to index
    %c0_74 = arith.constant 0 : index
    %274 = vector.load %arg14[%273, %c0_74] : memref<128x128xf32, #tpu.memory_space<vmem>>, vector<16x128xf32>
    %275 = vector.broadcast %243 : vector<1x128xf32> to vector<16x128xf32>
    %276 = arith.addf %274, %275 : vector<16x128xf32>
    %277 = arith.truncf %270 : vector<16x32xf32> to vector<16x32xbf16>
    %cst_75 = arith.constant dense<0.000000e+00> : vector<16x128xf32>
    %278 = tpu.matmul %277, %242, %cst_75 {dimension_numbers = #tpu.dot_dimension_numbers<[1], [0], [0], [1], [0, 0, 1, 1], [], []>} : vector<16x32xbf16>, vector<32x128xbf16>, vector<16x128xf32> -> vector<16x128xf32>
    %279 = arith.addf %276, %278 : vector<16x128xf32>
    %280 = vector.extract_strided_slice %279 {offsets = [0, 0], sizes = [16, 96], strides = [1, 1]} : vector<16x128xf32> to vector<16x96xf32>
    %281 = arith.negf %280 : vector<16x96xf32>
    %282 = math.exp %281 : vector<16x96xf32>
    %cst_76 = arith.constant 1.000000e+00 : f32
    %283 = vector.broadcast %cst_76 : f32 to vector<16x96xf32>
    %284 = arith.addf %283, %282 : vector<16x96xf32>
    %285 = arith.divf %283, %284 : vector<16x96xf32>
    %286 = vector.extract_strided_slice %279 {offsets = [0, 96], sizes = [16, 32], strides = [1, 1]} : vector<16x128xf32> to vector<16x32xf32>
    %287 = math.tanh %286 : vector<16x32xf32>
    %288 = vector.extract_strided_slice %285 {offsets = [0, 0], sizes = [16, 32], strides = [1, 1]} : vector<16x96xf32> to vector<16x32xf32>
    %289 = vector.extract_strided_slice %285 {offsets = [0, 32], sizes = [16, 32], strides = [1, 1]} : vector<16x96xf32> to vector<16x32xf32>
    %290 = vector.extract_strided_slice %285 {offsets = [0, 64], sizes = [16, 32], strides = [1, 1]} : vector<16x96xf32> to vector<16x32xf32>
    %291 = arith.mulf %289, %268 : vector<16x32xf32>
    %292 = arith.mulf %288, %287 : vector<16x32xf32>
    %293 = arith.addf %291, %292 : vector<16x32xf32>
    %294 = math.tanh %293 : vector<16x32xf32>
    %295 = arith.mulf %290, %294 : vector<16x32xf32>
    %c2_i32_77 = arith.constant 2 : i32
    %c16_i32_78 = arith.constant 16 : i32
    %296 = arith.muli %c2_i32_77, %c16_i32_78 : i32
    %297 = tpu.assume_multiple %296, 16 : i32
    %298 = arith.index_cast %297 : i32 to index
    %c0_79 = arith.constant 0 : index
    %299 = vector.load %arg14[%298, %c0_79] : memref<128x128xf32, #tpu.memory_space<vmem>>, vector<16x128xf32>
    %300 = vector.broadcast %243 : vector<1x128xf32> to vector<16x128xf32>
    %301 = arith.addf %299, %300 : vector<16x128xf32>
    %302 = arith.truncf %295 : vector<16x32xf32> to vector<16x32xbf16>
    %cst_80 = arith.constant dense<0.000000e+00> : vector<16x128xf32>
    %303 = tpu.matmul %302, %242, %cst_80 {dimension_numbers = #tpu.dot_dimension_numbers<[1], [0], [0], [1], [0, 0, 1, 1], [], []>} : vector<16x32xbf16>, vector<32x128xbf16>, vector<16x128xf32> -> vector<16x128xf32>
    %304 = arith.addf %301, %303 : vector<16x128xf32>
    %305 = vector.extract_strided_slice %304 {offsets = [0, 0], sizes = [16, 96], strides = [1, 1]} : vector<16x128xf32> to vector<16x96xf32>
    %306 = arith.negf %305 : vector<16x96xf32>
    %307 = math.exp %306 : vector<16x96xf32>
    %cst_81 = arith.constant 1.000000e+00 : f32
    %308 = vector.broadcast %cst_81 : f32 to vector<16x96xf32>
    %309 = arith.addf %308, %307 : vector<16x96xf32>
    %310 = arith.divf %308, %309 : vector<16x96xf32>
    %311 = vector.extract_strided_slice %304 {offsets = [0, 96], sizes = [16, 32], strides = [1, 1]} : vector<16x128xf32> to vector<16x32xf32>
    %312 = math.tanh %311 : vector<16x32xf32>
    %313 = vector.extract_strided_slice %310 {offsets = [0, 0], sizes = [16, 32], strides = [1, 1]} : vector<16x96xf32> to vector<16x32xf32>
    %314 = vector.extract_strided_slice %310 {offsets = [0, 32], sizes = [16, 32], strides = [1, 1]} : vector<16x96xf32> to vector<16x32xf32>
    %315 = vector.extract_strided_slice %310 {offsets = [0, 64], sizes = [16, 32], strides = [1, 1]} : vector<16x96xf32> to vector<16x32xf32>
    %316 = arith.mulf %314, %293 : vector<16x32xf32>
    %317 = arith.mulf %313, %312 : vector<16x32xf32>
    %318 = arith.addf %316, %317 : vector<16x32xf32>
    %319 = math.tanh %318 : vector<16x32xf32>
    %320 = arith.mulf %315, %319 : vector<16x32xf32>
    %c3_i32_82 = arith.constant 3 : i32
    %c16_i32_83 = arith.constant 16 : i32
    %321 = arith.muli %c3_i32_82, %c16_i32_83 : i32
    %322 = tpu.assume_multiple %321, 16 : i32
    %323 = arith.index_cast %322 : i32 to index
    %c0_84 = arith.constant 0 : index
    %324 = vector.load %arg14[%323, %c0_84] : memref<128x128xf32, #tpu.memory_space<vmem>>, vector<16x128xf32>
    %325 = vector.broadcast %243 : vector<1x128xf32> to vector<16x128xf32>
    %326 = arith.addf %324, %325 : vector<16x128xf32>
    %327 = arith.truncf %320 : vector<16x32xf32> to vector<16x32xbf16>
    %cst_85 = arith.constant dense<0.000000e+00> : vector<16x128xf32>
    %328 = tpu.matmul %327, %242, %cst_85 {dimension_numbers = #tpu.dot_dimension_numbers<[1], [0], [0], [1], [0, 0, 1, 1], [], []>} : vector<16x32xbf16>, vector<32x128xbf16>, vector<16x128xf32> -> vector<16x128xf32>
    %329 = arith.addf %326, %328 : vector<16x128xf32>
    %330 = vector.extract_strided_slice %329 {offsets = [0, 0], sizes = [16, 96], strides = [1, 1]} : vector<16x128xf32> to vector<16x96xf32>
    %331 = arith.negf %330 : vector<16x96xf32>
    %332 = math.exp %331 : vector<16x96xf32>
    %cst_86 = arith.constant 1.000000e+00 : f32
    %333 = vector.broadcast %cst_86 : f32 to vector<16x96xf32>
    %334 = arith.addf %333, %332 : vector<16x96xf32>
    %335 = arith.divf %333, %334 : vector<16x96xf32>
    %336 = vector.extract_strided_slice %329 {offsets = [0, 96], sizes = [16, 32], strides = [1, 1]} : vector<16x128xf32> to vector<16x32xf32>
    %337 = math.tanh %336 : vector<16x32xf32>
    %338 = vector.extract_strided_slice %335 {offsets = [0, 0], sizes = [16, 32], strides = [1, 1]} : vector<16x96xf32> to vector<16x32xf32>
    %339 = vector.extract_strided_slice %335 {offsets = [0, 32], sizes = [16, 32], strides = [1, 1]} : vector<16x96xf32> to vector<16x32xf32>
    %340 = vector.extract_strided_slice %335 {offsets = [0, 64], sizes = [16, 32], strides = [1, 1]} : vector<16x96xf32> to vector<16x32xf32>
    %341 = arith.mulf %339, %318 : vector<16x32xf32>
    %342 = arith.mulf %338, %337 : vector<16x32xf32>
    %343 = arith.addf %341, %342 : vector<16x32xf32>
    %344 = math.tanh %343 : vector<16x32xf32>
    %345 = arith.mulf %340, %344 : vector<16x32xf32>
    %c4_i32_87 = arith.constant 4 : i32
    %c16_i32_88 = arith.constant 16 : i32
    %346 = arith.muli %c4_i32_87, %c16_i32_88 : i32
    %347 = tpu.assume_multiple %346, 16 : i32
    %348 = arith.index_cast %347 : i32 to index
    %c0_89 = arith.constant 0 : index
    %349 = vector.load %arg14[%348, %c0_89] : memref<128x128xf32, #tpu.memory_space<vmem>>, vector<16x128xf32>
    %350 = vector.broadcast %243 : vector<1x128xf32> to vector<16x128xf32>
    %351 = arith.addf %349, %350 : vector<16x128xf32>
    %352 = arith.truncf %345 : vector<16x32xf32> to vector<16x32xbf16>
    %cst_90 = arith.constant dense<0.000000e+00> : vector<16x128xf32>
    %353 = tpu.matmul %352, %242, %cst_90 {dimension_numbers = #tpu.dot_dimension_numbers<[1], [0], [0], [1], [0, 0, 1, 1], [], []>} : vector<16x32xbf16>, vector<32x128xbf16>, vector<16x128xf32> -> vector<16x128xf32>
    %354 = arith.addf %351, %353 : vector<16x128xf32>
    %355 = vector.extract_strided_slice %354 {offsets = [0, 0], sizes = [16, 96], strides = [1, 1]} : vector<16x128xf32> to vector<16x96xf32>
    %356 = arith.negf %355 : vector<16x96xf32>
    %357 = math.exp %356 : vector<16x96xf32>
    %cst_91 = arith.constant 1.000000e+00 : f32
    %358 = vector.broadcast %cst_91 : f32 to vector<16x96xf32>
    %359 = arith.addf %358, %357 : vector<16x96xf32>
    %360 = arith.divf %358, %359 : vector<16x96xf32>
    %361 = vector.extract_strided_slice %354 {offsets = [0, 96], sizes = [16, 32], strides = [1, 1]} : vector<16x128xf32> to vector<16x32xf32>
    %362 = math.tanh %361 : vector<16x32xf32>
    %363 = vector.extract_strided_slice %360 {offsets = [0, 0], sizes = [16, 32], strides = [1, 1]} : vector<16x96xf32> to vector<16x32xf32>
    %364 = vector.extract_strided_slice %360 {offsets = [0, 32], sizes = [16, 32], strides = [1, 1]} : vector<16x96xf32> to vector<16x32xf32>
    %365 = vector.extract_strided_slice %360 {offsets = [0, 64], sizes = [16, 32], strides = [1, 1]} : vector<16x96xf32> to vector<16x32xf32>
    %366 = arith.mulf %364, %343 : vector<16x32xf32>
    %367 = arith.mulf %363, %362 : vector<16x32xf32>
    %368 = arith.addf %366, %367 : vector<16x32xf32>
    %369 = math.tanh %368 : vector<16x32xf32>
    %370 = arith.mulf %365, %369 : vector<16x32xf32>
    %c5_i32_92 = arith.constant 5 : i32
    %c16_i32_93 = arith.constant 16 : i32
    %371 = arith.muli %c5_i32_92, %c16_i32_93 : i32
    %372 = tpu.assume_multiple %371, 16 : i32
    %373 = arith.index_cast %372 : i32 to index
    %c0_94 = arith.constant 0 : index
    %374 = vector.load %arg14[%373, %c0_94] : memref<128x128xf32, #tpu.memory_space<vmem>>, vector<16x128xf32>
    %375 = vector.broadcast %243 : vector<1x128xf32> to vector<16x128xf32>
    %376 = arith.addf %374, %375 : vector<16x128xf32>
    %377 = arith.truncf %370 : vector<16x32xf32> to vector<16x32xbf16>
    %cst_95 = arith.constant dense<0.000000e+00> : vector<16x128xf32>
    %378 = tpu.matmul %377, %242, %cst_95 {dimension_numbers = #tpu.dot_dimension_numbers<[1], [0], [0], [1], [0, 0, 1, 1], [], []>} : vector<16x32xbf16>, vector<32x128xbf16>, vector<16x128xf32> -> vector<16x128xf32>
    %379 = arith.addf %376, %378 : vector<16x128xf32>
    %380 = vector.extract_strided_slice %379 {offsets = [0, 0], sizes = [16, 96], strides = [1, 1]} : vector<16x128xf32> to vector<16x96xf32>
    %381 = arith.negf %380 : vector<16x96xf32>
    %382 = math.exp %381 : vector<16x96xf32>
    %cst_96 = arith.constant 1.000000e+00 : f32
    %383 = vector.broadcast %cst_96 : f32 to vector<16x96xf32>
    %384 = arith.addf %383, %382 : vector<16x96xf32>
    %385 = arith.divf %383, %384 : vector<16x96xf32>
    %386 = vector.extract_strided_slice %379 {offsets = [0, 96], sizes = [16, 32], strides = [1, 1]} : vector<16x128xf32> to vector<16x32xf32>
    %387 = math.tanh %386 : vector<16x32xf32>
    %388 = vector.extract_strided_slice %385 {offsets = [0, 0], sizes = [16, 32], strides = [1, 1]} : vector<16x96xf32> to vector<16x32xf32>
    %389 = vector.extract_strided_slice %385 {offsets = [0, 32], sizes = [16, 32], strides = [1, 1]} : vector<16x96xf32> to vector<16x32xf32>
    %390 = vector.extract_strided_slice %385 {offsets = [0, 64], sizes = [16, 32], strides = [1, 1]} : vector<16x96xf32> to vector<16x32xf32>
    %391 = arith.mulf %389, %368 : vector<16x32xf32>
    %392 = arith.mulf %388, %387 : vector<16x32xf32>
    %393 = arith.addf %391, %392 : vector<16x32xf32>
    %394 = math.tanh %393 : vector<16x32xf32>
    %395 = arith.mulf %390, %394 : vector<16x32xf32>
    %c6_i32_97 = arith.constant 6 : i32
    %c16_i32_98 = arith.constant 16 : i32
    %396 = arith.muli %c6_i32_97, %c16_i32_98 : i32
    %397 = tpu.assume_multiple %396, 16 : i32
    %398 = arith.index_cast %397 : i32 to index
    %c0_99 = arith.constant 0 : index
    %399 = vector.load %arg14[%398, %c0_99] : memref<128x128xf32, #tpu.memory_space<vmem>>, vector<16x128xf32>
    %400 = vector.broadcast %243 : vector<1x128xf32> to vector<16x128xf32>
    %401 = arith.addf %399, %400 : vector<16x128xf32>
    %402 = arith.truncf %395 : vector<16x32xf32> to vector<16x32xbf16>
    %cst_100 = arith.constant dense<0.000000e+00> : vector<16x128xf32>
    %403 = tpu.matmul %402, %242, %cst_100 {dimension_numbers = #tpu.dot_dimension_numbers<[1], [0], [0], [1], [0, 0, 1, 1], [], []>} : vector<16x32xbf16>, vector<32x128xbf16>, vector<16x128xf32> -> vector<16x128xf32>
    %404 = arith.addf %401, %403 : vector<16x128xf32>
    %405 = vector.extract_strided_slice %404 {offsets = [0, 0], sizes = [16, 96], strides = [1, 1]} : vector<16x128xf32> to vector<16x96xf32>
    %406 = arith.negf %405 : vector<16x96xf32>
    %407 = math.exp %406 : vector<16x96xf32>
    %cst_101 = arith.constant 1.000000e+00 : f32
    %408 = vector.broadcast %cst_101 : f32 to vector<16x96xf32>
    %409 = arith.addf %408, %407 : vector<16x96xf32>
    %410 = arith.divf %408, %409 : vector<16x96xf32>
    %411 = vector.extract_strided_slice %404 {offsets = [0, 96], sizes = [16, 32], strides = [1, 1]} : vector<16x128xf32> to vector<16x32xf32>
    %412 = math.tanh %411 : vector<16x32xf32>
    %413 = vector.extract_strided_slice %410 {offsets = [0, 0], sizes = [16, 32], strides = [1, 1]} : vector<16x96xf32> to vector<16x32xf32>
    %414 = vector.extract_strided_slice %410 {offsets = [0, 32], sizes = [16, 32], strides = [1, 1]} : vector<16x96xf32> to vector<16x32xf32>
    %415 = vector.extract_strided_slice %410 {offsets = [0, 64], sizes = [16, 32], strides = [1, 1]} : vector<16x96xf32> to vector<16x32xf32>
    %416 = arith.mulf %414, %393 : vector<16x32xf32>
    %417 = arith.mulf %413, %412 : vector<16x32xf32>
    %418 = arith.addf %416, %417 : vector<16x32xf32>
    %419 = math.tanh %418 : vector<16x32xf32>
    %420 = arith.mulf %415, %419 : vector<16x32xf32>
    %c7_i32_102 = arith.constant 7 : i32
    %c16_i32_103 = arith.constant 16 : i32
    %421 = arith.muli %c7_i32_102, %c16_i32_103 : i32
    %422 = tpu.assume_multiple %421, 16 : i32
    %423 = arith.index_cast %422 : i32 to index
    %c0_104 = arith.constant 0 : index
    %424 = vector.load %arg14[%423, %c0_104] : memref<128x128xf32, #tpu.memory_space<vmem>>, vector<16x128xf32>
    %425 = vector.broadcast %243 : vector<1x128xf32> to vector<16x128xf32>
    %426 = arith.addf %424, %425 : vector<16x128xf32>
    %427 = arith.truncf %420 : vector<16x32xf32> to vector<16x32xbf16>
    %cst_105 = arith.constant dense<0.000000e+00> : vector<16x128xf32>
    %428 = tpu.matmul %427, %242, %cst_105 {dimension_numbers = #tpu.dot_dimension_numbers<[1], [0], [0], [1], [0, 0, 1, 1], [], []>} : vector<16x32xbf16>, vector<32x128xbf16>, vector<16x128xf32> -> vector<16x128xf32>
    %429 = arith.addf %426, %428 : vector<16x128xf32>
    %430 = vector.extract_strided_slice %429 {offsets = [0, 0], sizes = [16, 96], strides = [1, 1]} : vector<16x128xf32> to vector<16x96xf32>
    %431 = arith.negf %430 : vector<16x96xf32>
    %432 = math.exp %431 : vector<16x96xf32>
    %cst_106 = arith.constant 1.000000e+00 : f32
    %433 = vector.broadcast %cst_106 : f32 to vector<16x96xf32>
    %434 = arith.addf %433, %432 : vector<16x96xf32>
    %435 = arith.divf %433, %434 : vector<16x96xf32>
    %436 = vector.extract_strided_slice %429 {offsets = [0, 96], sizes = [16, 32], strides = [1, 1]} : vector<16x128xf32> to vector<16x32xf32>
    %437 = math.tanh %436 : vector<16x32xf32>
    %438 = vector.extract_strided_slice %435 {offsets = [0, 0], sizes = [16, 32], strides = [1, 1]} : vector<16x96xf32> to vector<16x32xf32>
    %439 = vector.extract_strided_slice %435 {offsets = [0, 32], sizes = [16, 32], strides = [1, 1]} : vector<16x96xf32> to vector<16x32xf32>
    %440 = vector.extract_strided_slice %435 {offsets = [0, 64], sizes = [16, 32], strides = [1, 1]} : vector<16x96xf32> to vector<16x32xf32>
    %441 = arith.mulf %439, %418 : vector<16x32xf32>
    %442 = arith.mulf %438, %437 : vector<16x32xf32>
    %443 = arith.addf %441, %442 : vector<16x32xf32>
    %444 = math.tanh %443 : vector<16x32xf32>
    %445 = arith.mulf %440, %444 : vector<16x32xf32>
    %c8_i32_107 = arith.constant 8 : i32
    %c0_108 = arith.constant 0 : index
    %c0_109 = arith.constant 0 : index
    %446 = vector.load %arg8[%c0_108, %c0_109] : memref<1x32xf32, #tpu.memory_space<vmem>>, vector<1x32xf32>
    %447 = vector.broadcast %446 : vector<1x32xf32> to vector<16x32xf32>
    %448 = arith.mulf %445, %447 : vector<16x32xf32>
    %c0_110 = arith.constant 0 : index
    %c0_111 = arith.constant 0 : index
    %449 = vector.load %arg9[%c0_110, %c0_111] : memref<1x32xf32, #tpu.memory_space<vmem>>, vector<1x32xf32>
    %450 = vector.broadcast %449 : vector<1x32xf32> to vector<16x32xf32>
    %451 = arith.addf %448, %450 : vector<16x32xf32>
    %cst_112 = arith.constant 0.000000e+00 : f32
    %452 = vector.broadcast %cst_112 : f32 to vector<16x32xf32>
    %453 = arith.maximumf %451, %452 : vector<16x32xf32>
    %454 = arith.truncf %453 : vector<16x32xf32> to vector<16x32xbf16>
    %c0_113 = arith.constant 0 : index
    %c0_114 = arith.constant 0 : index
    %455 = vector.load %arg10[%c0_113, %c0_114] : memref<32x128xbf16, #tpu.memory_space<vmem>>, vector<32x128xbf16>
    %cst_115 = arith.constant dense<0.000000e+00> : vector<16x128xf32>
    %456 = tpu.matmul %454, %455, %cst_115 {dimension_numbers = #tpu.dot_dimension_numbers<[1], [0], [0], [1], [0, 0, 1, 1], [], []>} : vector<16x32xbf16>, vector<32x128xbf16>, vector<16x128xf32> -> vector<16x128xf32>
    %c0_116 = arith.constant 0 : index
    %c0_117 = arith.constant 0 : index
    %457 = vector.load %arg11[%c0_116, %c0_117] : memref<1x128xf32, #tpu.memory_space<vmem>>, vector<1x128xf32>
    %458 = vector.broadcast %457 : vector<1x128xf32> to vector<16x128xf32>
    %459 = arith.addf %456, %458 : vector<16x128xf32>
    %c0_118 = arith.constant 0 : index
    %c0_119 = arith.constant 0 : index
    %460 = vector.load %arg12[%c0_118, %c0_119] : memref<16x128xf32, #tpu.memory_space<vmem>>, vector<16x128xf32>
    tpu.vector_store %arg12[%c0_118, %c0_119], %459 {strides = array<i32>} : memref<16x128xf32, #tpu.memory_space<vmem>>, vector<16x128xf32>,
    return
  }
  func.func @transform_0(%arg0: i32) -> (i32, i32, i32) {
    %c0_i32 = arith.constant 0 : i32
    %c0_i32_0 = arith.constant 0 : i32
    %c0_i32_1 = arith.constant 0 : i32
    return %arg0, %c0_i32, %c0_i32_0 : i32, i32, i32
  }
  func.func @transform_1(%arg0: i32) -> (i32, i32) {
    %c0_i32 = arith.constant 0 : i32
    %c0_i32_0 = arith.constant 0 : i32
    %c0_i32_1 = arith.constant 0 : i32
    return %c0_i32, %c0_i32_0 : i32, i32
  }
  func.func @transform_2(%arg0: i32) -> (i32, i32) {
    %c0_i32 = arith.constant 0 : i32
    %c0_i32_0 = arith.constant 0 : i32
    %c0_i32_1 = arith.constant 0 : i32
    return %c0_i32, %c0_i32_0 : i32, i32
  }
  func.func @transform_3(%arg0: i32) -> (i32, i32) {
    %c0_i32 = arith.constant 0 : i32
    %c0_i32_0 = arith.constant 0 : i32
    %c0_i32_1 = arith.constant 0 : i32
    return %c0_i32, %c0_i32_0 : i32, i32
  }
  func.func @transform_4(%arg0: i32) -> (i32, i32) {
    %c0_i32 = arith.constant 0 : i32
    %c0_i32_0 = arith.constant 0 : i32
    %c0_i32_1 = arith.constant 0 : i32
    return %c0_i32, %c0_i32_0 : i32, i32
  }
  func.func @transform_5(%arg0: i32) -> (i32, i32) {
    %c0_i32 = arith.constant 0 : i32
    %c0_i32_0 = arith.constant 0 : i32
    %c0_i32_1 = arith.constant 0 : i32
    return %c0_i32, %c0_i32_0 : i32, i32
  }
  func.func @transform_6(%arg0: i32) -> (i32, i32) {
    %c0_i32 = arith.constant 0 : i32
    %c0_i32_0 = arith.constant 0 : i32
    %c0_i32_1 = arith.constant 0 : i32
    return %c0_i32, %c0_i32_0 : i32, i32
  }
  func.func @transform_7(%arg0: i32) -> (i32, i32) {
    %c0_i32 = arith.constant 0 : i32
    %c0_i32_0 = arith.constant 0 : i32
    %c0_i32_1 = arith.constant 0 : i32
    return %c0_i32, %c0_i32_0 : i32, i32
  }
  func.func @transform_8(%arg0: i32) -> (i32, i32) {
    %c0_i32 = arith.constant 0 : i32
    %c0_i32_0 = arith.constant 0 : i32
    %c0_i32_1 = arith.constant 0 : i32
    return %c0_i32, %c0_i32_0 : i32, i32
  }
  func.func @transform_9(%arg0: i32) -> (i32, i32) {
    %c0_i32 = arith.constant 0 : i32
    %c0_i32_0 = arith.constant 0 : i32
    %c0_i32_1 = arith.constant 0 : i32
    return %c0_i32, %c0_i32_0 : i32, i32
  }
  func.func @transform_10(%arg0: i32) -> (i32, i32) {
    %c0_i32 = arith.constant 0 : i32
    %c0_i32_0 = arith.constant 0 : i32
    %c0_i32_1 = arith.constant 0 : i32
    return %c0_i32, %c0_i32_0 : i32, i32
  }
  func.func @transform_11(%arg0: i32) -> (i32, i32) {
    %c0_i32 = arith.constant 0 : i32
    %c0_i32_0 = arith.constant 0 : i32
    return %arg0, %c0_i32 : i32, i32
  }
}

</mosaic_0001>

<bundles_post_ra>
// kernel: siamese_lstm_forward.1
= control target key start
LH: loop header
LB: loop body
LE: loop exit
PB: predicated region body
PF: predicated region fallthrough
CT: control target
= control target key end

     0   :  { %vm103_vm0 = vcmask 130048   ;;  %v3100_v1 = vmov 0.0   ;;  %vm3101_vm1 = vmmov 0   ;;  %v3102_v12 = vmov 0   ;;  %s3628_s1 = inlined_call_operand.vmem [shape: bf16[16,128], index: 1, kind: input, shape index: {}]   ;;  %s3629_s0 = inlined_call_operand.vmem [shape: bf16[1,128,16], index: 0, kind: input, shape index: {}]   ;;  %s3630_s2 = inlined_call_operand.vmem [shape: bf16[32,128], index: 2, kind: input, shape index: {}]   ;;  %s3631_s3 = inlined_call_operand.vmem [shape: f32[1,128], index: 3, kind: input, shape index: {}]   ;;  %s3632_s4 = inlined_call_operand.vmem [shape: bf16[32,128], index: 4, kind: input, shape index: {}]   ;;  %s3633_s5 = inlined_call_operand.vmem [shape: bf16[32,128], index: 5, kind: input, shape index: {}]   ;;  %s3634_s6 = inlined_call_operand.vmem [shape: f32[1,128], index: 6, kind: input, shape index: {}]   ;;  %s3635_s7 = inlined_call_operand.vmem [shape: f32[1,32], index: 7, kind: input, shape index: {}]   ;;  %s3636_s9 = inlined_call_operand.vmem [shape: bf16[32,128], index: 9, kind: input, shape index: {}]   ;;  %s3637_s8 = inlined_call_operand.vmem [shape: f32[1,32], index: 8, kind: input, shape index: {}]   ;;  %s3638_s10 = inlined_call_operand.vmem [shape: f32[1,128], index: 10, kind: input, shape index: {}]   ;;  %s3639_s11 = inlined_call_operand.vmem [shape: f32[16,128], index: 11, kind: output, shape index: {}]  }
   0x1   :  { %v2827_v0 = vld [vmem:[%s3628_s1] sm:$0xff]   ;;  %2618 = vmatprep.subr.bf16.mxu1 %v3100_v1  ;;  %2622 = vmatprep.mubr.msk.bf16.mxu1 %vm3101_vm1, %v3100_v1  ;;  %v2829_v3 = vld [vmem:[%s3629_s0 + $0x8] sm:$0xff]   ;;  %v2831_v5 = vld [vmem:[%s3629_s0 + $0x10] sm:$0xff]   ;;  %vm272_vm2 = vcmask 261120  }
   0x2   :  { %v2828_v2 = vld [vmem:[%s3629_s0] sm:$0xff]   ;;  %2560 = vmatprep.subr.bf16.mxu0 %v2827_v0  ;;  %v3194_v6 = vld [vmem:[%s3630_s2 + $0x8] sm:$0xff]   ;;  %v2832_v7 = vld [vmem:[%s3629_s0 + $0x18] sm:$0xff]  }
   0x3   :  { %2561 = vmatpush3.bf16.msra.mxu0 %v2827_v0  ;;  %2562 = vmatprep.mubr.msk.bf16.mxu0 %vm103_vm0, %v2828_v2  ;;  %v3181_v4 = vld [vmem:[%s3630_s2] sm:$0xff]   ;;  %v2834_v9 = vld [vmem:[%s3629_s0 + $0x28] sm:$0xff]   ;;  %v2836_v10 = vld [vmem:[%s3629_s0 + $0x30] sm:$0xff]  }
   0x4   :  { %2578 = vmatprep.subr.bf16.mxu0 %v3100_v1  ;;  %v2833_v8 = vld [vmem:[%s3629_s0 + $0x20] sm:$0xff]   ;;  %v2837_v11 = vld [vmem:[%s3629_s0 + $0x38] sm:$0xff]   ;;  %s3103_s0 = smov 32  }
   0x5   :  { %v2408_v13 = vld [vmem:[%s3631_s3] ss:$0 sm:$0xff] }
   0x6   :  { %2563 = vmatmul.mubr.msk.bf16.vlgmr.msra.gmra.mrb[0].mxu0 %vm103_vm0, %v2829_v3 }
   0x7   :  { %2579 = vmatpush3.bf16.msra.mxu0 %v3181_v4  ;;  %2566 = vmatprep.mubr.msk.bf16.mxu0 %vm103_vm0, %v2831_v5 }
   0x8   :  { %2580 = vmatprep.subr.bf16.mxu0 %v3100_v1 }
   0xb   :  { %2581 = vmatpush3.bf16.msra.mxu0 %v3194_v6 }
   0xc   :  { %2586 = vmatprep.subr.bf16.mxu0 %v3100_v1 }
   0xe   :  { %2567 = vmatmul.mubr.msk.bf16.gmra.mrb[4].mxu0 %vm103_vm0, %v2832_v7 }
   0xf   :  { %2570 = vmatprep.mubr.msk.bf16.mxu0 %vm103_vm0, %v2833_v8 }
  0x16   :  { %2571 = vmatmul.mubr.msk.bf16.gmra.mrb[8].mxu0 %vm103_vm0, %v2834_v9 }
  0x17   :  { %2574 = vmatprep.mubr.msk.bf16.mxu0 %vm103_vm0, %v2836_v10 }
  0x1e   :  { %2575 = vmatmul.mubr.msk.bf16.gmra.mrb[12].mxu0 %vm103_vm0, %v2837_v11  ;;  %v3267_v11 = vld [vmem:[%s3632_s4] sm:$0xff]  }
  0x1f   :  { %2582 = vmatprep.mubr.msk.bf16.mxu0 %vm3101_vm1, %v3100_v1  ;;  %2619 = vmatpush3.bf16.msra.mxu1 %v3267_v11 }
  0x20   :  { %2620 = vmatprep.subr.bf16.mxu1 %v3100_v1 }
  0x26   :  { %2583 = vmatmul.mubr.bf16.vlgmr.msra.gmra.mrb[16].mxu0 %v3102_v12 }
  0x27   :  { %2590 = vmatprep.mubr.msk.bf16.mxu0 %vm3101_vm1, %v3100_v1  ;;  %2587 = vmatpush3.bf16.msra.mxu0 %v3267_v11 }
  0x28   :  { %2588 = vmatprep.subr.bf16.mxu0 %v3100_v1 }
  0xd9   :  { %v2564_v14 = vpop.f32.mrb[0].mxu0 }
  0xda   :  { %v3226_v15 = vadd.f32 %v2564_v14, %v2408_v13  ;;  %v162_v16 = vpop.f32.mrb[1].mxu0 }
  0xdb   :  { %v2565_v17 = vpop.f32.mrb[2].mxu0  ;;  %v258_v44 = vadd.f32 %v2408_v13, %v162_v16 }
  0xdc   :  { %v3228_v18 = vadd.f32 %v2565_v17, %v2408_v13  ;;  %v165_v19 = vpop.f32.mrb[3].mxu0 }
  0xdd   :  { %v259_v46 = vadd.f32 %v2408_v13, %v165_v19 }
  0xe1   :  { %v2568_v20 = vpop.f32.mrb[4].mxu0 }
  0xe2   :  { %v3230_v21 = vadd.f32 %v2568_v20, %v2408_v13  ;;  %v178_v22 = vpop.f32.mrb[5].mxu0 }
  0xe3   :  { %v3232_v23 = vadd.f32 %v2408_v13, %v178_v22  ;;  %v2569_v24 = vpop.f32.mrb[6].mxu0 }
  0xe4   :  { %v3234_v25 = vadd.f32 %v2569_v24, %v2408_v13  ;;  %v181_v26 = vpop.f32.mrb[7].mxu0 }
  0xe5   :  { %v3236_v27 = vadd.f32 %v2408_v13, %v181_v26 }
  0xe9   :  { %v2572_v28 = vpop.f32.mrb[8].mxu0 }
  0xea   :  { %v3238_v29 = vadd.f32 %v2572_v28, %v2408_v13  ;;  %v194_v30 = vpop.f32.mrb[9].mxu0 }
  0xeb   :  { %v3240_v31 = vadd.f32 %v2408_v13, %v194_v30  ;;  %v2573_v32 = vpop.f32.mrb[10].mxu0 }
  0xec   :  { %v3242_v33 = vadd.f32 %v2573_v32, %v2408_v13  ;;  %v197_v34 = vpop.f32.mrb[11].mxu0 }
  0xed   :  { %v3244_v35 = vadd.f32 %v2408_v13, %v197_v34 }
  0xf1   :  { %v2576_v36 = vpop.f32.mrb[12].mxu0 }
  0xf2   :  { %v3246_v37 = vadd.f32 %v2576_v36, %v2408_v13  ;;  %v210_v38 = vpop.f32.mrb[13].mxu0 }
  0xf3   :  { %v3248_v39 = vadd.f32 %v2408_v13, %v210_v38  ;;  %v2577_v40 = vpop.f32.mrb[14].mxu0 }
  0xf4   :  { %v3250_v41 = vadd.f32 %v2577_v40, %v2408_v13  ;;  %v213_v42 = vpop.f32.mrb[15].mxu0 }
  0xf5   :  { %v3252_v43 = vadd.f32 %v2408_v13, %v213_v42  ;;  %v3273_v13 = vld [vmem:[%s3632_s4 + $0x8] sm:$0xff]   ;;  %s3104_s4 = smov 64  }
  0xf6   :  { %2589 = vmatpush3.bf16.msra.mxu0 %v3273_v13  ;;  %2621 = vmatpush3.bf16.msra.mxu1 %v3273_v13 }
  0xf7   :  { %2594 = vmatprep.subr.bf16.mxu0 %v3100_v1  ;;  %2634 = vmatprep.subr.bf16.mxu1 %v3100_v1 }
  0xf9   :  { %v310_v45 = vpop.f32.mrb[16].mxu0 }
  0xfa   :  { %v317_v47 = vadd.f32 %v310_v45, %v258_v44  ;;  %v2584_v48 = vpop.f32.mrb[17].mxu0 }
  0xfb   :  { %v313_v49 = vpop.f32.mrb[18].mxu0 }
  0xfc   :  { %2844 = vtanh.f32 %v317_v47  ;;  %v318_v50 = vadd.f32 %v313_v49, %v259_v46  ;;  %v2585_v51 = vpop.f32.mrb[19].mxu0  ;;  %v2411_v54 = vmul.f32 -1.442695, %v317_v47 }
  0xfe   :  { %2846 = vtanh.f32 %v318_v50  ;;  %v2412_v55 = vmul.f32 -1.442695, %v318_v50 }
  0xff   :  { %2848 = vpow2.f32 %v2411_v54 }
 0x100   :  { %2850 = vpow2.f32 %v2412_v55 }
 0x106   :  { %v2845_v52 = vpop.eup %2844 }
 0x107   :  { %337 = vrot.lane.b32.xlu0 %v2845_v52, %s3103_s0 }
 0x108   :  { %v2847_v53 = vpop.eup %2846 }
 0x109   :  { %v2849_v56 = vpop.eup %2848 }
 0x10a   :  { %v325_v57 = vadd.f32 1.0, %v2849_v56  ;;  %v2851_v58 = vpop.eup %2850 }
 0x10b   :  { %339 = vrot.lane.b32.xlu0 %v2847_v53, %s3103_s0  ;;  %v326_v59 = vadd.f32 1.0, %v2851_v58 }
 0x10c   :  { %2852 = vrcp.f32 %v325_v57 }
 0x10d   :  { %2854 = vrcp.f32 %v326_v59 }
 0x116   :  { %v2853_v60 = vpop.eup %2852 }
 0x117   :  { %v2855_v63 = vpop.eup %2854  ;;  %v333_v3 = vmul.f32 0.0, %v2853_v60 }
 0x118   :  { %v334_v8 = vmul.f32 0.0, %v2855_v63 }
 0x179   :  { %v338_v61 = vpop.permute.xlu0 %337 }
 0x17a   :  { %v343_v62 = vmul.f32 %v2853_v60, %v338_v61 }
 0x17c   :  { %347 = vrot.lane.b32.xlu1 %v343_v62, %s3103_s0 }
 0x17d   :  { %v340_v0 = vpop.permute.xlu0 %339 }
 0x17e   :  { %v344_v2 = vmul.f32 %v2855_v63, %v340_v0 }
 0x180   :  { %349 = vrot.lane.b32.xlu1 %v344_v2, %s3103_s0 }
 0x1ee   :  { %v348_v5 = vpop.permute.xlu1 %347 }
 0x1ef   :  { %v3258_v7 = vadd.f32 %v348_v5, %v333_v3 }
 0x1f1   :  { %2856 = vtanh.f32 %v3258_v7 }
 0x1f2   :  { %v350_v9 = vpop.permute.xlu1 %349 }
 0x1f3   :  { %v3261_v10 = vadd.f32 %v350_v9, %v334_v8 }
 0x1f5   :  { %2858 = vtanh.f32 %v3261_v10 }
 0x1fb   :  { %v2857_v14 = vpop.eup %2856 }
 0x1fc   :  { %359 = vrot.lane.b32.xlu0 %v2857_v14, %s3103_s0 }
 0x1ff   :  { %v2859_v16 = vpop.eup %2858 }
 0x200   :  { %361 = vrot.lane.b32.xlu1 %v2859_v16, %s3103_s0 }
 0x26e   :  { %v360_v17 = vpop.permute.xlu0 %359 }
 0x26f   :  { %v365_v20 = vmul.f32 %v2853_v60, %v360_v17 }
 0x272   :  { %v362_v19 = vpop.permute.xlu1 %361 }
 0x273   :  { %v366_v22 = vmul.f32 %v2855_v63, %v362_v19 }
 0x275   :  { %v367_v24 = vpack.c.bf16 %v366_v22, %v365_v20 }
 0x277   :  { %369 = vrot.lane.b32.xlu0 %v367_v24, %s3104_s4 }
 0x2e9   :  { %v370_v26 = vpop.permute.xlu0 %369 }
 0x2ea   :  { %2591 = vmatmul.mubr.msk.bf16.vlgmr.msra.gmra.mrb[20].mxu0 %vm272_vm2, %v370_v26 }
 0x2eb   :  { %2595 = vmatpush3.bf16.msra.mxu0 %v3181_v4  ;;  %2598 = vmatprep.mubr.msk.bf16.mxu0 %vm3101_vm1, %v3100_v1 }
 0x2ec   :  { %2596 = vmatprep.subr.bf16.mxu0 %v3100_v1 }
 0x2ef   :  { %2597 = vmatpush3.bf16.msra.mxu0 %v3194_v6 }
 0x2f0   :  { %2602 = vmatprep.subr.bf16.mxu0 %v3100_v1 }
 0x2f2   :  { %2599 = vmatmul.mubr.msk.bf16.vlgmr.msra.gmra.mrb[24].mxu0 %vm272_vm2, %v370_v26 }
 0x2f3   :  { %2603 = vmatpush3.bf16.msra.mxu0 %v3267_v11  ;;  %2606 = vmatprep.mubr.msk.bf16.mxu0 %vm3101_vm1, %v3100_v1 }
 0x2f4   :  { %2604 = vmatprep.subr.bf16.mxu0 %v3100_v1 }
 0x2f7   :  { %2605 = vmatpush3.bf16.msra.mxu0 %v3273_v13 }
 0x2f8   :  { %2610 = vmatprep.subr.bf16.mxu0 %v3100_v1 }
 0x3bd   :  { %v3299_v28 = vpop.f32.mrb[20].mxu0 }
 0x3be   :  { %v2592_v30 = vpop.f32.mrb[21].mxu0 }
 0x3bf   :  { %v3301_v32 = vpop.f32.mrb[22].mxu0 }
 0x3c0   :  { %v2593_v34 = vpop.f32.mrb[23].mxu0 }
 0x3c5   :  { %v468_v36 = vpop.f32.mrb[24].mxu0 }
 0x3c6   :  { %v475_v38 = vadd.f32 %v468_v36, %v3226_v15  ;;  %v2600_v40 = vpop.f32.mrb[25].mxu0 }
 0x3c7   :  { %v471_v42 = vpop.f32.mrb[26].mxu0 }
 0x3c8   :  { %2860 = vtanh.f32 %v475_v38  ;;  %v476_v44 = vadd.f32 %v471_v42, %v3228_v18  ;;  %v2601_v45 = vpop.f32.mrb[27].mxu0  ;;  %v2417_v48 = vmul.f32 -1.442695, %v475_v38 }
 0x3ca   :  { %2862 = vtanh.f32 %v476_v44  ;;  %v2418_v49 = vmul.f32 -1.442695, %v476_v44 }
 0x3cb   :  { %2864 = vpow2.f32 %v2417_v48 }
 0x3cc   :  { %2866 = vpow2.f32 %v2418_v49 }
 0x3d2   :  { %v2861_v46 = vpop.eup %2860 }
 0x3d3   :  { %495 = vrot.lane.b32.xlu1 %v2861_v46, %s3103_s0 }
 0x3d4   :  { %v2863_v47 = vpop.eup %2862 }
 0x3d5   :  { %497 = vrot.lane.b32.xlu0 %v2863_v47, %s3103_s0  ;;  %v2865_v50 = vpop.eup %2864 }
 0x3d6   :  { %v2867_v51 = vpop.eup %2866  ;;  %v483_v15 = vadd.f32 1.0, %v2865_v50 }
 0x3d7   :  { %v484_v52 = vadd.f32 1.0, %v2867_v51 }
 0x3d8   :  { %2868 = vrcp.f32 %v483_v15 }
 0x3d9   :  { %2870 = vrcp.f32 %v484_v52 }
 0x3e2   :  { %v2869_v53 = vpop.eup %2868 }
 0x3e3   :  { %v2871_v55 = vpop.eup %2870  ;;  %v491_v58 = vmul.f32 %v2869_v53, %v3258_v7 }
 0x3e4   :  { %v492_v61 = vmul.f32 %v2871_v55, %v3261_v10 }
 0x445   :  { %v496_v18 = vpop.permute.xlu1 %495 }
 0x446   :  { %v501_v54 = vmul.f32 %v2869_v53, %v496_v18 }
 0x447   :  { %v498_v56 = vpop.permute.xlu0 %497 }
 0x448   :  { %505 = vrot.lane.b32.xlu1 %v501_v54, %s3103_s0  ;;  %v502_v57 = vmul.f32 %v2871_v55, %v498_v56 }
 0x44a   :  { %507 = vrot.lane.b32.xlu0 %v502_v57, %s3103_s0 }
 0x4ba   :  { %v506_v59 = vpop.permute.xlu1 %505 }
 0x4bb   :  { %v3310_v60 = vadd.f32 %v506_v59, %v491_v58 }
 0x4bc   :  { %v508_v62 = vpop.permute.xlu0 %507 }
 0x4bd   :  { %2872 = vtanh.f32 %v3310_v60  ;;  %v512_v63 = vadd.f32 %v508_v62, %v492_v61 }
 0x4bf   :  { %2874 = vtanh.f32 %v512_v63 }
 0x4c7   :  { %v2873_v0 = vpop.eup %2872 }
 0x4c8   :  { %517 = vrot.lane.b32.xlu1 %v2873_v0, %s3103_s0 }
 0x4c9   :  { %v2875_v2 = vpop.eup %2874 }
 0x4ca   :  { %519 = vrot.lane.b32.xlu0 %v2875_v2, %s3103_s0 }
 0x53a   :  { %v518_v3 = vpop.permute.xlu1 %517 }
 0x53b   :  { %v523_v8 = vmul.f32 %v2869_v53, %v518_v3 }
 0x53c   :  { %v520_v5 = vpop.permute.xlu0 %519 }
 0x53d   :  { %v524_v7 = vmul.f32 %v2871_v55, %v520_v5 }
 0x53f   :  { %v525_v9 = vpack.c.bf16 %v524_v7, %v523_v8 }
 0x541   :  { %527 = vrot.lane.b32.xlu1 %v525_v9, %s3104_s4 }
 0x5b3   :  { %v528_v14 = vpop.permute.xlu1 %527 }
 0x5b4   :  { %2607 = vmatmul.mubr.msk.bf16.vlgmr.msra.gmra.mrb[28].mxu0 %vm272_vm2, %v528_v14 }
 0x5b5   :  { %2611 = vmatpush3.bf16.msra.mxu0 %v3181_v4  ;;  %2614 = vmatprep.mubr.msk.bf16.mxu0 %vm3101_vm1, %v3100_v1 }
 0x5b6   :  { %2612 = vmatprep.subr.bf16.mxu0 %v3100_v1 }
 0x5b9   :  { %2613 = vmatpush3.bf16.msra.mxu0 %v3194_v6 }
 0x5ba   :  { %2626 = vmatprep.subr.bf16.mxu0 %v3100_v1 }
 0x5bc   :  { %2615 = vmatmul.mubr.msk.bf16.vlgmr.msra.gmra.mrb[32].mxu0 %vm272_vm2, %v528_v14 }
 0x5bd   :  { %2627 = vmatpush3.bf16.msra.mxu0 %v3181_v4  ;;  %2630 = vmatprep.mubr.msk.bf16.mxu0 %vm3101_vm1, %v3100_v1 }
 0x5be   :  { %2628 = vmatprep.subr.bf16.mxu0 %v3100_v1 }
 0x5c1   :  { %2629 = vmatpush3.bf16.msra.mxu0 %v3194_v6 }
 0x5c2   :  { %2642 = vmatprep.subr.bf16.mxu0 %v3100_v1 }
 0x687   :  { %v3331_v10 = vpop.f32.mrb[28].mxu0 }
 0x688   :  { %v2608_v16 = vpop.f32.mrb[29].mxu0 }
 0x689   :  { %v3333_v17 = vpop.f32.mrb[30].mxu0 }
 0x68a   :  { %v2609_v19 = vpop.f32.mrb[31].mxu0 }
 0x68f   :  { %v615_v20 = vpop.f32.mrb[32].mxu0 }
 0x690   :  { %v622_v22 = vadd.f32 %v615_v20, %v3232_v23  ;;  %v2616_v24 = vpop.f32.mrb[33].mxu0 }
 0x691   :  { %v618_v26 = vpop.f32.mrb[34].mxu0 }
 0x692   :  { %2876 = vtanh.f32 %v622_v22  ;;  %v623_v30 = vadd.f32 %v618_v26, %v3236_v27  ;;  %v2617_v34 = vpop.f32.mrb[35].mxu0  ;;  %v2421_v40 = vmul.f32 -1.442695, %v622_v22 }
 0x694   :  { %2878 = vtanh.f32 %v623_v30  ;;  %v2422_v42 = vmul.f32 -1.442695, %v623_v30 }
 0x695   :  { %2880 = vpow2.f32 %v2421_v40 }
 0x696   :  { %2882 = vpow2.f32 %v2422_v42 }
 0x69c   :  { %v2877_v36 = vpop.eup %2876 }
 0x69d   :  { %642 = vrot.lane.b32.xlu0 %v2877_v36, %s3103_s0 }
 0x69e   :  { %v2879_v38 = vpop.eup %2878 }
 0x69f   :  { %644 = vrot.lane.b32.xlu1 %v2879_v38, %s3103_s0  ;;  %v2881_v44 = vpop.eup %2880 }
 0x6a0   :  { %v2883_v45 = vpop.eup %2882  ;;  %v630_v23 = vadd.f32 1.0, %v2881_v44 }
 0x6a1   :  { %v631_v46 = vadd.f32 1.0, %v2883_v45 }
 0x6a2   :  { %2884 = vrcp.f32 %v630_v23 }
 0x6a3   :  { %2886 = vrcp.f32 %v631_v46 }
 0x6ac   :  { %v2885_v47 = vpop.eup %2884 }
 0x6ad   :  { %v2887_v49 = vpop.eup %2886  ;;  %v638_v15 = vmul.f32 %v2885_v47, %v3310_v60 }
 0x6ae   :  { %v639_v18 = vmul.f32 %v2887_v49, %v512_v63 }
 0x70f   :  { %v643_v27 = vpop.permute.xlu0 %642 }
 0x710   :  { %v648_v48 = vmul.f32 %v2885_v47, %v643_v27 }
 0x711   :  { %v645_v50 = vpop.permute.xlu1 %644 }
 0x712   :  { %652 = vrot.lane.b32.xlu0 %v648_v48, %s3103_s0  ;;  %v649_v51 = vmul.f32 %v2887_v49, %v645_v50 }
 0x714   :  { %654 = vrot.lane.b32.xlu1 %v649_v51, %s3103_s0 }
 0x784   :  { %v653_v52 = vpop.permute.xlu0 %652 }
 0x785   :  { %v658_v53 = vadd.f32 %v653_v52, %v638_v15 }
 0x786   :  { %v655_v54 = vpop.permute.xlu1 %654 }
 0x787   :  { %2888 = vtanh.f32 %v658_v53  ;;  %v659_v55 = vadd.f32 %v655_v54, %v639_v18 }
 0x789   :  { %2890 = vtanh.f32 %v659_v55 }
 0x791   :  { %v2889_v56 = vpop.eup %2888 }
 0x792   :  { %664 = vrot.lane.b32.xlu0 %v2889_v56, %s3103_s0 }
 0x793   :  { %v2891_v57 = vpop.eup %2890 }
 0x794   :  { %666 = vrot.lane.b32.xlu1 %v2891_v57, %s3103_s0 }
 0x804   :  { %v665_v58 = vpop.permute.xlu0 %664 }
 0x805   :  { %v670_v61 = vmul.f32 %v2885_v47, %v665_v58 }
 0x806   :  { %v667_v59 = vpop.permute.xlu1 %666 }
 0x807   :  { %v671_v62 = vmul.f32 %v2887_v49, %v667_v59 }
 0x809   :  { %v672_v0 = vpack.c.bf16 %v671_v62, %v670_v61 }
 0x80b   :  { %674 = vrot.lane.b32.xlu0 %v672_v0, %s3104_s4 }
 0x87d   :  { %v675_v60 = vpop.permute.xlu0 %674 }
 0x87e   :  { %2623 = vmatmul.mubr.msk.bf16.vlgmr.msra.gmra.mrb[0].mxu1 %vm272_vm2, %v675_v60  ;;  %2631 = vmatmul.mubr.msk.bf16.vlgmr.msra.gmra.mrb[36].mxu0 %vm272_vm2, %v675_v60 }
 0x87f   :  { %2635 = vmatpush3.bf16.msra.mxu1 %v3267_v11  ;;  %2643 = vmatpush3.bf16.msra.mxu0 %v3181_v4 }
 0x880   :  { %2636 = vmatprep.subr.bf16.mxu1 %v3100_v1  ;;  %2644 = vmatprep.subr.bf16.mxu0 %v3100_v1 }
 0x881   :  { %2638 = vmatprep.mubr.msk.bf16.mxu1 %vm3101_vm1, %v3100_v1  ;;  %2646 = vmatprep.mubr.msk.bf16.mxu0 %vm3101_vm1, %v3100_v1 }
 0x883   :  { %2637 = vmatpush3.bf16.msra.mxu1 %v3273_v13  ;;  %2645 = vmatpush3.bf16.msra.mxu0 %v3194_v6 }
 0x884   :  { %2650 = vmatprep.subr.bf16.mxu1 %v3100_v1  ;;  %2658 = vmatprep.subr.bf16.mxu0 %v3100_v1 }
 0x951   :  { %v762_v63 = vpop.f32.mrb[36].mxu0 }
 0x952   :  { %v769_v2 = vadd.f32 %v762_v63, %v3230_v21  ;;  %v2632_v3 = vpop.f32.mrb[37].mxu0 }
 0x953   :  { %v765_v5 = vpop.f32.mrb[38].mxu0 }
 0x954   :  { %2892 = vtanh.f32 %v769_v2  ;;  %v770_v8 = vadd.f32 %v765_v5, %v3234_v25  ;;  %v2633_v7 = vpop.f32.mrb[39].mxu0  ;;  %v2425_v16 = vmul.f32 -1.442695, %v769_v2 }
 0x956   :  { %2894 = vtanh.f32 %v770_v8  ;;  %v2426_v19 = vmul.f32 -1.442695, %v770_v8 }
 0x957   :  { %2896 = vpow2.f32 %v2425_v16 }
 0x958   :  { %2898 = vpow2.f32 %v2426_v19 }
 0x95e   :  { %v2893_v9 = vpop.eup %2892 }
 0x95f   :  { %789 = vrot.lane.b32.xlu1 %v2893_v9, %s3103_s0 }
 0x960   :  { %v2895_v14 = vpop.eup %2894 }
 0x961   :  { %791 = vrot.lane.b32.xlu0 %v2895_v14, %s3103_s0  ;;  %v2897_v20 = vpop.eup %2896 }
 0x962   :  { %v2899_v22 = vpop.eup %2898  ;;  %v777_v21 = vadd.f32 1.0, %v2897_v20 }
 0x963   :  { %v778_v24 = vadd.f32 1.0, %v2899_v22 }
 0x964   :  { %2900 = vrcp.f32 %v777_v21 }
 0x965   :  { %2902 = vrcp.f32 %v778_v24 }
 0x96e   :  { %v2901_v26 = vpop.eup %2900 }
 0x96f   :  { %v2903_v34 = vpop.eup %2902  ;;  %v785_v40 = vmul.f32 %v2901_v26, %v658_v53 }
 0x970   :  { %v786_v45 = vmul.f32 %v2903_v34, %v659_v55 }
 0x9d1   :  { %v790_v25 = vpop.permute.xlu1 %789 }
 0x9d2   :  { %v795_v30 = vmul.f32 %v2901_v26, %v790_v25 }
 0x9d3   :  { %v792_v36 = vpop.permute.xlu0 %791 }
 0x9d4   :  { %799 = vrot.lane.b32.xlu1 %v795_v30, %s3103_s0  ;;  %v796_v38 = vmul.f32 %v2903_v34, %v792_v36 }
 0x9d6   :  { %801 = vrot.lane.b32.xlu0 %v796_v38, %s3103_s0 }
 0xa46   :  { %v800_v42 = vpop.permute.xlu1 %799 }
 0xa47   :  { %v805_v44 = vadd.f32 %v800_v42, %v785_v40 }
 0xa48   :  { %v802_v23 = vpop.permute.xlu0 %801 }
 0xa49   :  { %2904 = vtanh.f32 %v805_v44  ;;  %v806_v46 = vadd.f32 %v802_v23, %v786_v45 }
 0xa4b   :  { %2906 = vtanh.f32 %v806_v46 }
 0xa53   :  { %v2905_v47 = vpop.eup %2904 }
 0xa54   :  { %811 = vrot.lane.b32.xlu1 %v2905_v47, %s3103_s0 }
 0xa55   :  { %v2907_v27 = vpop.eup %2906 }
 0xa56   :  { %813 = vrot.lane.b32.xlu0 %v2907_v27, %s3103_s0 }
 0xac6   :  { %v812_v48 = vpop.permute.xlu1 %811 }
 0xac7   :  { %v817_v50 = vmul.f32 %v2901_v26, %v812_v48 }
 0xac8   :  { %v814_v49 = vpop.permute.xlu0 %813 }
 0xac9   :  { %v818_v51 = vmul.f32 %v2903_v34, %v814_v49 }
 0xacb   :  { %v819_v15 = vpack.c.bf16 %v818_v51, %v817_v50 }
 0xacd   :  { %821 = vrot.lane.b32.xlu1 %v819_v15, %s3104_s4 }
 0xb3f   :  { %v822_v52 = vpop.permute.xlu1 %821 }
 0xb40   :  { %2639 = vmatmul.mubr.msk.bf16.vlgmr.msra.gmra.mrb[4].mxu1 %vm272_vm2, %v822_v52  ;;  %2647 = vmatmul.mubr.msk.bf16.vlgmr.msra.gmra.mrb[40].mxu0 %vm272_vm2, %v822_v52 }
 0xb41   :  { %2651 = vmatpush3.bf16.msra.mxu1 %v3267_v11  ;;  %2659 = vmatpush3.bf16.msra.mxu0 %v3181_v4 }
 0xb42   :  { %2652 = vmatprep.subr.bf16.mxu1 %v3100_v1  ;;  %2660 = vmatprep.subr.bf16.mxu0 %v3100_v1 }
 0xb43   :  { %2654 = vmatprep.mubr.msk.bf16.mxu1 %vm3101_vm1, %v3100_v1  ;;  %2662 = vmatprep.mubr.msk.bf16.mxu0 %vm3101_vm1, %v3100_v1 }
 0xb45   :  { %2653 = vmatpush3.bf16.msra.mxu1 %v3273_v13  ;;  %2661 = vmatpush3.bf16.msra.mxu0 %v3194_v6 }
 0xb46   :  { %2666 = vmatprep.subr.bf16.mxu1 %v3100_v1  ;;  %2674 = vmatprep.subr.bf16.mxu0 %v3100_v1 }
 0xc13   :  { %v909_v53 = vpop.f32.mrb[40].mxu0 }
 0xc14   :  { %v916_v18 = vadd.f32 %v909_v53, %v3240_v31  ;;  %v2648_v54 = vpop.f32.mrb[41].mxu0 }
 0xc15   :  { %v912_v55 = vpop.f32.mrb[42].mxu0 }
 0xc16   :  { %2908 = vtanh.f32 %v916_v18  ;;  %v917_v56 = vadd.f32 %v912_v55, %v3244_v35  ;;  %v2649_v57 = vpop.f32.mrb[43].mxu0  ;;  %v2429_v61 = vmul.f32 -1.442695, %v916_v18 }
 0xc18   :  { %2910 = vtanh.f32 %v917_v56  ;;  %v2430_v62 = vmul.f32 -1.442695, %v917_v56 }
 0xc19   :  { %2912 = vpow2.f32 %v2429_v61 }
 0xc1a   :  { %2914 = vpow2.f32 %v2430_v62 }
 0xc20   :  { %v2909_v58 = vpop.eup %2908 }
 0xc21   :  { %936 = vrot.lane.b32.xlu0 %v2909_v58, %s3103_s0 }
 0xc22   :  { %v2911_v59 = vpop.eup %2910 }
 0xc23   :  { %938 = vrot.lane.b32.xlu1 %v2911_v59, %s3103_s0  ;;  %v2913_v0 = vpop.eup %2912 }
 0xc24   :  { %v2915_v60 = vpop.eup %2914  ;;  %v924_v31 = vadd.f32 1.0, %v2913_v0 }
 0xc25   :  { %v925_v63 = vadd.f32 1.0, %v2915_v60 }
 0xc26   :  { %2916 = vrcp.f32 %v924_v31 }
 0xc27   :  { %2918 = vrcp.f32 %v925_v63 }
 0xc30   :  { %v2917_v2 = vpop.eup %2916 }
 0xc31   :  { %v2919_v5 = vpop.eup %2918  ;;  %v932_v9 = vmul.f32 %v2917_v2, %v805_v44 }
 0xc32   :  { %v933_v19 = vmul.f32 %v2919_v5, %v806_v46 }
 0xc93   :  { %v937_v35 = vpop.permute.xlu0 %936 }
 0xc94   :  { %v942_v3 = vmul.f32 %v2917_v2, %v937_v35 }
 0xc95   :  { %v939_v8 = vpop.permute.xlu1 %938 }
 0xc96   :  { %946 = vrot.lane.b32.xlu0 %v942_v3, %s3103_s0  ;;  %v943_v7 = vmul.f32 %v2919_v5, %v939_v8 }
 0xc98   :  { %948 = vrot.lane.b32.xlu1 %v943_v7, %s3103_s0 }
 0xd08   :  { %v947_v14 = vpop.permute.xlu0 %946 }
 0xd09   :  { %v952_v16 = vadd.f32 %v947_v14, %v932_v9 }
 0xd0a   :  { %v949_v20 = vpop.permute.xlu1 %948 }
 0xd0b   :  { %2920 = vtanh.f32 %v952_v16  ;;  %v953_v22 = vadd.f32 %v949_v20, %v933_v19 }
 0xd0d   :  { %2922 = vtanh.f32 %v953_v22 }
 0xd15   :  { %v2921_v21 = vpop.eup %2920 }
 0xd16   :  { %958 = vrot.lane.b32.xlu0 %v2921_v21, %s3103_s0 }
 0xd17   :  { %v2923_v24 = vpop.eup %2922 }
 0xd18   :  { %960 = vrot.lane.b32.xlu1 %v2923_v24, %s3103_s0 }
 0xd88   :  { %v959_v26 = vpop.permute.xlu0 %958 }
 0xd89   :  { %v964_v30 = vmul.f32 %v2917_v2, %v959_v26 }
 0xd8a   :  { %v961_v25 = vpop.permute.xlu1 %960 }
 0xd8b   :  { %v965_v34 = vmul.f32 %v2919_v5, %v961_v25 }
 0xd8d   :  { %v966_v36 = vpack.c.bf16 %v965_v34, %v964_v30 }
 0xd8f   :  { %968 = vrot.lane.b32.xlu0 %v966_v36, %s3104_s4 }
 0xe01   :  { %v969_v38 = vpop.permute.xlu0 %968 }
 0xe02   :  { %2655 = vmatmul.mubr.msk.bf16.vlgmr.msra.gmra.mrb[8].mxu1 %vm272_vm2, %v969_v38  ;;  %2663 = vmatmul.mubr.msk.bf16.vlgmr.msra.gmra.mrb[44].mxu0 %vm272_vm2, %v969_v38 }
 0xe03   :  { %2667 = vmatpush3.bf16.msra.mxu1 %v3267_v11  ;;  %2675 = vmatpush3.bf16.msra.mxu0 %v3181_v4 }
 0xe04   :  { %2668 = vmatprep.subr.bf16.mxu1 %v3100_v1  ;;  %2676 = vmatprep.subr.bf16.mxu0 %v3100_v1 }
 0xe05   :  { %2670 = vmatprep.mubr.msk.bf16.mxu1 %vm3101_vm1, %v3100_v1  ;;  %2678 = vmatprep.mubr.msk.bf16.mxu0 %vm3101_vm1, %v3100_v1 }
 0xe07   :  { %2669 = vmatpush3.bf16.msra.mxu1 %v3273_v13  ;;  %2677 = vmatpush3.bf16.msra.mxu0 %v3194_v6 }
 0xe08   :  { %2682 = vmatprep.subr.bf16.mxu1 %v3100_v1  ;;  %2690 = vmatprep.subr.bf16.mxu0 %v3100_v1 }
 0xed5   :  { %v1056_v40 = vpop.f32.mrb[44].mxu0 }
 0xed6   :  { %v1063_v42 = vadd.f32 %v1056_v40, %v3238_v29  ;;  %v2664_v44 = vpop.f32.mrb[45].mxu0 }
 0xed7   :  { %v1059_v45 = vpop.f32.mrb[46].mxu0 }
 0xed8   :  { %2924 = vtanh.f32 %v1063_v42  ;;  %v1064_v23 = vadd.f32 %v1059_v45, %v3242_v33  ;;  %v2665_v46 = vpop.f32.mrb[47].mxu0  ;;  %v2433_v48 = vmul.f32 -1.442695, %v1063_v42 }
 0xeda   :  { %2926 = vtanh.f32 %v1064_v23  ;;  %v2434_v49 = vmul.f32 -1.442695, %v1064_v23 }
 0xedb   :  { %2928 = vpow2.f32 %v2433_v48 }
 0xedc   :  { %2930 = vpow2.f32 %v2434_v49 }
 0xee2   :  { %v2925_v47 = vpop.eup %2924 }
 0xee3   :  { %1083 = vrot.lane.b32.xlu1 %v2925_v47, %s3103_s0 }
 0xee4   :  { %v2927_v27 = vpop.eup %2926 }
 0xee5   :  { %1085 = vrot.lane.b32.xlu0 %v2927_v27, %s3103_s0  ;;  %v2929_v50 = vpop.eup %2928 }
 0xee6   :  { %v2931_v51 = vpop.eup %2930  ;;  %v1071_v29 = vadd.f32 1.0, %v2929_v50 }
 0xee7   :  { %v1072_v15 = vadd.f32 1.0, %v2931_v51 }
 0xee8   :  { %2932 = vrcp.f32 %v1071_v29 }
 0xee9   :  { %2934 = vrcp.f32 %v1072_v15 }
 0xef2   :  { %v2933_v52 = vpop.eup %2932 }
 0xef3   :  { %v2935_v18 = vpop.eup %2934  ;;  %v1079_v56 = vmul.f32 %v2933_v52, %v952_v16 }
 0xef4   :  { %v1080_v59 = vmul.f32 %v2935_v18, %v953_v22 }
 0xf55   :  { %v1084_v33 = vpop.permute.xlu1 %1083 }
 0xf56   :  { %v1089_v53 = vmul.f32 %v2933_v52, %v1084_v33 }
 0xf57   :  { %v1086_v54 = vpop.permute.xlu0 %1085 }
 0xf58   :  { %1093 = vrot.lane.b32.xlu1 %v1089_v53, %s3103_s0  ;;  %v1090_v55 = vmul.f32 %v2935_v18, %v1086_v54 }
 0xf5a   :  { %1095 = vrot.lane.b32.xlu0 %v1090_v55, %s3103_s0 }
 0xfca   :  { %v1094_v57 = vpop.permute.xlu1 %1093 }
 0xfcb   :  { %v1099_v58 = vadd.f32 %v1094_v57, %v1079_v56 }
 0xfcc   :  { %v1096_v61 = vpop.permute.xlu0 %1095 }
 0xfcd   :  { %2936 = vtanh.f32 %v1099_v58  ;;  %v1100_v62 = vadd.f32 %v1096_v61, %v1080_v59 }
 0xfcf   :  { %2938 = vtanh.f32 %v1100_v62 }
 0xfd7   :  { %v2937_v0 = vpop.eup %2936 }
 0xfd8   :  { %1105 = vrot.lane.b32.xlu1 %v2937_v0, %s3103_s0 }
 0xfd9   :  { %v2939_v60 = vpop.eup %2938 }
 0xfda   :  { %1107 = vrot.lane.b32.xlu0 %v2939_v60, %s3103_s0 }
0x104a   :  { %v1106_v31 = vpop.permute.xlu1 %1105 }
0x104b   :  { %v1111_v2 = vmul.f32 %v2933_v52, %v1106_v31 }
0x104c   :  { %v1108_v63 = vpop.permute.xlu0 %1107 }
0x104d   :  { %v1112_v35 = vmul.f32 %v2935_v18, %v1108_v63 }
0x104f   :  { %v1113_v3 = vpack.c.bf16 %v1112_v35, %v1111_v2 }
0x1051   :  { %1115 = vrot.lane.b32.xlu1 %v1113_v3, %s3104_s4 }
0x10c3   :  { %v1116_v5 = vpop.permute.xlu1 %1115 }
0x10c4   :  { %2671 = vmatmul.mubr.msk.bf16.vlgmr.msra.gmra.mrb[12].mxu1 %vm272_vm2, %v1116_v5  ;;  %2679 = vmatmul.mubr.msk.bf16.vlgmr.msra.gmra.mrb[48].mxu0 %vm272_vm2, %v1116_v5 }
0x10c5   :  { %2683 = vmatpush3.bf16.msra.mxu1 %v3267_v11  ;;  %2691 = vmatpush3.bf16.msra.mxu0 %v3181_v4 }
0x10c6   :  { %2684 = vmatprep.subr.bf16.mxu1 %v3100_v1  ;;  %2692 = vmatprep.subr.bf16.mxu0 %v3100_v1 }
0x10c7   :  { %2686 = vmatprep.mubr.msk.bf16.mxu1 %vm3101_vm1, %v3100_v1  ;;  %2694 = vmatprep.mubr.msk.bf16.mxu0 %vm3101_vm1, %v3100_v1 }
0x10c9   :  { %2685 = vmatpush3.bf16.msra.mxu1 %v3273_v13  ;;  %2693 = vmatpush3.bf16.msra.mxu0 %v3194_v6 }
0x10ca   :  { %2698 = vmatprep.subr.bf16.mxu1 %v3100_v1  ;;  %2770 = vmatprep.subr.bf16.mxu0 %v3100_v1 }
0x1197   :  { %v1203_v8 = vpop.f32.mrb[48].mxu0 }
0x1198   :  { %v1210_v4 = vadd.f32 %v1203_v8, %v3248_v39  ;;  %v2680_v7 = vpop.f32.mrb[49].mxu0 }
0x1199   :  { %v1206_v9 = vpop.f32.mrb[50].mxu0 }
0x119a   :  { %2940 = vtanh.f32 %v1210_v4  ;;  %v1211_v14 = vadd.f32 %v1206_v9, %v3252_v43  ;;  %v2681_v16 = vpop.f32.mrb[51].mxu0  ;;  %v2437_v6 = vmul.f32 -1.442695, %v1210_v4 }
0x119c   :  { %2942 = vtanh.f32 %v1211_v14  ;;  %v2438_v22 = vmul.f32 -1.442695, %v1211_v14 }
0x119d   :  { %2944 = vpow2.f32 %v2437_v6 }
0x119e   :  { %2946 = vpow2.f32 %v2438_v22  ;;  %v3459_v22 = vld [vmem:[%s3633_s5] sm:$0xff]  }
0x11a4   :  { %v2941_v19 = vpop.eup %2940 }
0x11a5   :  { %1230 = vrot.lane.b32.xlu0 %v2941_v19, %s3103_s0 }
0x11a6   :  { %v2943_v20 = vpop.eup %2942 }
0x11a7   :  { %1232 = vrot.lane.b32.xlu1 %v2943_v20, %s3103_s0  ;;  %v2945_v21 = vpop.eup %2944 }
0x11a8   :  { %v2947_v24 = vpop.eup %2946  ;;  %v1218_v39 = vadd.f32 1.0, %v2945_v21 }
0x11a9   :  { %v1219_v26 = vadd.f32 1.0, %v2947_v24  ;;  %v3466_v24 = vld [vmem:[%s3633_s5 + $0x8] sm:$0xff]  }
0x11aa   :  { %2948 = vrcp.f32 %v1218_v39  ;;  %v3483_v39 = vld [vmem:[%s3634_s6] ss:$0 sm:$0xff] }
0x11ab   :  { %2950 = vrcp.f32 %v1219_v26  ;;  %v1471_v26 = vadd.f32 %v3483_v39, %v3299_v28 }
0x11b4   :  { %v2949_v25 = vpop.eup %2948 }
0x11b5   :  { %v2951_v34 = vpop.eup %2950  ;;  %v1226_v40 = vmul.f32 %v2949_v25, %v1099_v58 }
0x11b6   :  { %v1227_v45 = vmul.f32 %v2951_v34, %v1100_v62 }
0x1217   :  { %v1231_v43 = vpop.permute.xlu0 %1230 }
0x1218   :  { %v1236_v30 = vmul.f32 %v2949_v25, %v1231_v43 }
0x1219   :  { %v1233_v36 = vpop.permute.xlu1 %1232 }
0x121a   :  { %1240 = vrot.lane.b32.xlu0 %v1236_v30, %s3103_s0  ;;  %v1237_v38 = vmul.f32 %v2951_v34, %v1233_v36 }
0x121c   :  { %1242 = vrot.lane.b32.xlu1 %v1237_v38, %s3103_s0 }
0x128c   :  { %v1241_v42 = vpop.permute.xlu0 %1240 }
0x128d   :  { %v1246_v44 = vadd.f32 %v1241_v42, %v1226_v40 }
0x128e   :  { %v1243_v23 = vpop.permute.xlu1 %1242 }
0x128f   :  { %2952 = vtanh.f32 %v1246_v44  ;;  %v1247_v46 = vadd.f32 %v1243_v23, %v1227_v45 }
0x1291   :  { %2954 = vtanh.f32 %v1247_v46 }
0x1299   :  { %v2953_v47 = vpop.eup %2952 }
0x129a   :  { %1252 = vrot.lane.b32.xlu0 %v2953_v47, %s3103_s0 }
0x129b   :  { %v2955_v27 = vpop.eup %2954 }
0x129c   :  { %1254 = vrot.lane.b32.xlu1 %v2955_v27, %s3103_s0 }
0x130c   :  { %v1253_v48 = vpop.permute.xlu0 %1252 }
0x130d   :  { %v1258_v50 = vmul.f32 %v2949_v25, %v1253_v48  ;;  %v1472_v25 = vadd.f32 %v3483_v39, %v3301_v32 }
0x130e   :  { %v1255_v49 = vpop.permute.xlu1 %1254 }
0x130f   :  { %v1259_v51 = vmul.f32 %v2951_v34, %v1255_v49 }
0x1311   :  { %v1260_v29 = vpack.c.bf16 %v1259_v51, %v1258_v50 }
0x1313   :  { %1262 = vrot.lane.b32.xlu0 %v1260_v29, %s3104_s4 }
0x1385   :  { %v1263_v15 = vpop.permute.xlu0 %1262 }
0x1386   :  { %2687 = vmatmul.mubr.msk.bf16.vlgmr.msra.gmra.mrb[16].mxu1 %vm272_vm2, %v1263_v15  ;;  %2695 = vmatmul.mubr.msk.bf16.vlgmr.msra.gmra.mrb[52].mxu0 %vm272_vm2, %v1263_v15 }
0x1387   :  { %2699 = vmatpush3.bf16.msra.mxu1 %v3267_v11  ;;  %2702 = vmatprep.mubr.msk.bf16.mxu1 %vm3101_vm1, %v3100_v1 }
0x1388   :  { %2700 = vmatprep.subr.bf16.mxu1 %v3100_v1  ;;  %2774 = vmatprep.mubr.msk.bf16.mxu0 %vm3101_vm1, %v3100_v1 }
0x138b   :  { %2701 = vmatpush3.bf16.msra.mxu1 %v3273_v13 }
0x138c   :  { %2706 = vmatprep.subr.bf16.mxu1 %v3100_v1 }
0x1459   :  { %v1350_v52 = vpop.f32.mrb[52].mxu0 }
0x145a   :  { %v1357_v33 = vadd.f32 %v1350_v52, %v3246_v37  ;;  %v2696_v53 = vpop.f32.mrb[53].mxu0 }
0x145b   :  { %v1353_v18 = vpop.f32.mrb[54].mxu0 }
0x145c   :  { %2956 = vtanh.f32 %v1357_v33  ;;  %v1358_v11 = vadd.f32 %v1353_v18, %v3250_v41  ;;  %v2697_v54 = vpop.f32.mrb[55].mxu0  ;;  %v2441_v57 = vmul.f32 -1.442695, %v1357_v33 }
0x145e   :  { %2958 = vtanh.f32 %v1358_v11  ;;  %v2442_v13 = vmul.f32 -1.442695, %v1358_v11 }
0x145f   :  { %2960 = vpow2.f32 %v2441_v57 }
0x1460   :  { %2962 = vpow2.f32 %v2442_v13 }
0x1466   :  { %v2957_v55 = vpop.eup %2956 }
0x1467   :  { %1377 = vrot.lane.b32.xlu1 %v2957_v55, %s3103_s0 }
0x1468   :  { %v2959_v56 = vpop.eup %2958 }
0x1469   :  { %1379 = vrot.lane.b32.xlu0 %v2959_v56, %s3103_s0  ;;  %v2961_v58 = vpop.eup %2960 }
0x146a   :  { %v2963_v59 = vpop.eup %2962  ;;  %v1365_v37 = vadd.f32 1.0, %v2961_v58 }
0x146b   :  { %v1366_v61 = vadd.f32 1.0, %v2963_v59 }
0x146c   :  { %2964 = vrcp.f32 %v1365_v37  ;;  %v1578_v37 = vadd.f32 %v3483_v39, %v3331_v10 }
0x146d   :  { %2966 = vrcp.f32 %v1366_v61 }
0x1476   :  { %v2965_v62 = vpop.eup %2964 }
0x1477   :  { %v2967_v60 = vpop.eup %2966  ;;  %v1373_v2 = vmul.f32 %v2965_v62, %v1246_v44 }
0x1478   :  { %v1374_v5 = vmul.f32 %v2967_v60, %v1247_v46 }
0x14d9   :  { %v1378_v41 = vpop.permute.xlu1 %1377 }
0x14da   :  { %v1383_v0 = vmul.f32 %v2965_v62, %v1378_v41 }
0x14db   :  { %v1380_v31 = vpop.permute.xlu0 %1379 }
0x14dc   :  { %1387 = vrot.lane.b32.xlu1 %v1383_v0, %s3103_s0  ;;  %v1384_v63 = vmul.f32 %v2967_v60, %v1380_v31 }
0x14de   :  { %1389 = vrot.lane.b32.xlu0 %v1384_v63, %s3103_s0 }
0x154e   :  { %v1388_v35 = vpop.permute.xlu1 %1387 }
0x154f   :  { %v1393_v3 = vadd.f32 %v1388_v35, %v1373_v2 }
0x1550   :  { %v1390_v8 = vpop.permute.xlu0 %1389 }
0x1551   :  { %2968 = vtanh.f32 %v1393_v3  ;;  %v1394_v4 = vadd.f32 %v1390_v8, %v1374_v5 }
0x1553   :  { %2970 = vtanh.f32 %v1394_v4 }
0x155b   :  { %v2969_v7 = vpop.eup %2968 }
0x155c   :  { %1399 = vrot.lane.b32.xlu1 %v2969_v7, %s3103_s0 }
0x155d   :  { %v2971_v9 = vpop.eup %2970 }
0x155e   :  { %1401 = vrot.lane.b32.xlu0 %v2971_v9, %s3103_s0 }
0x15ce   :  { %v1400_v14 = vpop.permute.xlu1 %1399 }
0x15cf   :  { %v1405_v19 = vmul.f32 %v2965_v62, %v1400_v14  ;;  %v1579_v62 = vadd.f32 %v3483_v39, %v3333_v17 }
0x15d0   :  { %v1402_v16 = vpop.permute.xlu0 %1401 }
0x15d1   :  { %v1406_v20 = vmul.f32 %v2967_v60, %v1402_v16 }
0x15d3   :  { %v1407_v6 = vpack.c.bf16 %v1406_v20, %v1405_v19 }
0x15d5   :  { %1409 = vrot.lane.b32.xlu1 %v1407_v6, %s3104_s4 }
0x1647   :  { %v1410_v21 = vpop.permute.xlu1 %1409 }
0x1648   :  { %2703 = vmatmul.mubr.msk.bf16.vlgmr.msra.gmra.mrb[20].mxu1 %vm272_vm2, %v1410_v21 }
0x1649   :  { %2707 = vmatpush3.bf16.msra.mxu1 %v3459_v22  ;;  %2710 = vmatprep.mubr.msk.bf16.mxu1 %vm3101_vm1, %v3100_v1 }
0x164a   :  { %2708 = vmatprep.subr.bf16.mxu1 %v3100_v1 }
0x164d   :  { %2709 = vmatpush3.bf16.msra.mxu1 %v3466_v24 }
0x164e   :  { %2714 = vmatprep.subr.bf16.mxu1 %v3100_v1 }
0x1650   :  { %2711 = vmatmul.mubr.bf16.vlgmr.msra.gmra.mrb[24].mxu1 %v3102_v12 }
0x1651   :  { %2715 = vmatpush3.bf16.msra.mxu1 %v3459_v22  ;;  %2718 = vmatprep.mubr.msk.bf16.mxu1 %vm3101_vm1, %v3100_v1 }
0x1652   :  { %2716 = vmatprep.subr.bf16.mxu1 %v3100_v1 }
0x1655   :  { %2717 = vmatpush3.bf16.msra.mxu1 %v3466_v24 }
0x1656   :  { %2722 = vmatprep.subr.bf16.mxu1 %v3100_v1 }
0x1723   :  { %v1519_v12 = vpop.f32.mrb[24].mxu1 }
0x1724   :  { %v1526_v43 = vadd.f32 %v1519_v12, %v1471_v26  ;;  %v2712_v30 = vpop.f32.mrb[25].mxu1 }
0x1725   :  { %v1522_v34 = vpop.f32.mrb[26].mxu1 }
0x1726   :  { %2972 = vtanh.f32 %v1526_v43  ;;  %v1527_v36 = vadd.f32 %v1522_v34, %v1472_v25  ;;  %v2713_v38 = vpop.f32.mrb[27].mxu1  ;;  %v2447_v44 = vmul.f32 -1.442695, %v1526_v43 }
0x1728   :  { %2974 = vtanh.f32 %v1527_v36  ;;  %v2448_v45 = vmul.f32 -1.442695, %v1527_v36 }
0x1729   :  { %2976 = vpow2.f32 %v2447_v44 }
0x172a   :  { %2978 = vpow2.f32 %v2448_v45 }
0x1730   :  { %v2973_v40 = vpop.eup %2972 }
0x1731   :  { %1546 = vrot.lane.b32.xlu0 %v2973_v40, %s3103_s0 }
0x1732   :  { %v2975_v42 = vpop.eup %2974 }
0x1733   :  { %1548 = vrot.lane.b32.xlu1 %v2975_v42, %s3103_s0  ;;  %v2977_v28 = vpop.eup %2976 }
0x1734   :  { %v2979_v23 = vpop.eup %2978  ;;  %v1534_v32 = vadd.f32 1.0, %v2977_v28 }
0x1735   :  { %v1535_v46 = vadd.f32 1.0, %v2979_v23 }
0x1736   :  { %2980 = vrcp.f32 %v1534_v32 }
0x1737   :  { %2982 = vrcp.f32 %v1535_v46 }
0x1740   :  { %v2981_v47 = vpop.eup %2980 }
0x1741   :  { %v2983_v49 = vpop.eup %2982  ;;  %v1542_v29 = vmul.f32 0.0, %v2981_v47 }
0x1742   :  { %v1543_v33 = vmul.f32 0.0, %v2983_v49 }
0x17a3   :  { %v1547_v27 = vpop.permute.xlu0 %1546 }
0x17a4   :  { %v1552_v48 = vmul.f32 %v2981_v47, %v1547_v27 }
0x17a5   :  { %v1549_v50 = vpop.permute.xlu1 %1548 }
0x17a6   :  { %1556 = vrot.lane.b32.xlu0 %v1552_v48, %s3103_s0  ;;  %v1553_v51 = vmul.f32 %v2983_v49, %v1549_v50 }
0x17a8   :  { %1558 = vrot.lane.b32.xlu1 %v1553_v51, %s3103_s0 }
0x1818   :  { %v1557_v15 = vpop.permute.xlu0 %1556 }
0x1819   :  { %v1562_v52 = vadd.f32 %v1557_v15, %v1542_v29 }
0x181a   :  { %v1559_v53 = vpop.permute.xlu1 %1558 }
0x181b   :  { %2984 = vtanh.f32 %v1562_v52  ;;  %v1563_v18 = vadd.f32 %v1559_v53, %v1543_v33 }
0x181d   :  { %2986 = vtanh.f32 %v1563_v18 }
0x1825   :  { %v2985_v11 = vpop.eup %2984 }
0x1826   :  { %1568 = vrot.lane.b32.xlu0 %v2985_v11, %s3103_s0 }
0x1827   :  { %v2987_v54 = vpop.eup %2986 }
0x1828   :  { %1570 = vrot.lane.b32.xlu1 %v2987_v54, %s3103_s0 }
0x1898   :  { %v1569_v55 = vpop.permute.xlu0 %1568 }
0x1899   :  { %v1574_v57 = vmul.f32 %v2981_v47, %v1569_v55 }
0x189a   :  { %v1571_v56 = vpop.permute.xlu1 %1570 }
0x189b   :  { %v1575_v13 = vmul.f32 %v2983_v49, %v1571_v56 }
0x189d   :  { %v1580_v58 = vpack.c.bf16 %v1575_v13, %v1574_v57 }
0x189f   :  { %1582 = vrot.lane.b32.xlu0 %v1580_v58, %s3104_s4 }
0x1911   :  { %v1583_v59 = vpop.permute.xlu0 %1582 }
0x1912   :  { %2719 = vmatmul.mubr.msk.bf16.vlgmr.msra.gmra.mrb[28].mxu1 %vm272_vm2, %v1583_v59 }
0x1913   :  { %2723 = vmatpush3.bf16.msra.mxu1 %v3459_v22  ;;  %2726 = vmatprep.mubr.msk.bf16.mxu1 %vm3101_vm1, %v3100_v1 }
0x1914   :  { %2724 = vmatprep.subr.bf16.mxu1 %v3100_v1 }
0x1917   :  { %2725 = vmatpush3.bf16.msra.mxu1 %v3466_v24 }
0x1918   :  { %2730 = vmatprep.subr.bf16.mxu1 %v3100_v1 }
0x19e5   :  { %v1621_v61 = vpop.f32.mrb[28].mxu1 }
0x19e6   :  { %v1628_v41 = vadd.f32 %v1621_v61, %v1578_v37  ;;  %v2720_v0 = vpop.f32.mrb[29].mxu1 }
0x19e7   :  { %v1624_v60 = vpop.f32.mrb[30].mxu1 }
0x19e8   :  { %2988 = vtanh.f32 %v1628_v41  ;;  %v1629_v31 = vadd.f32 %v1624_v60, %v1579_v62  ;;  %v2721_v63 = vpop.f32.mrb[31].mxu1  ;;  %v2450_v3 = vmul.f32 -1.442695, %v1628_v41 }
0x19ea   :  { %2990 = vtanh.f32 %v1629_v31  ;;  %v2451_v5 = vmul.f32 -1.442695, %v1629_v31 }
0x19eb   :  { %2992 = vpow2.f32 %v2450_v3 }
0x19ec   :  { %2994 = vpow2.f32 %v2451_v5 }
0x19f2   :  { %v2989_v2 = vpop.eup %2988 }
0x19f3   :  { %1648 = vrot.lane.b32.xlu1 %v2989_v2, %s3103_s0 }
0x19f4   :  { %v2991_v35 = vpop.eup %2990 }
0x19f5   :  { %1650 = vrot.lane.b32.xlu0 %v2991_v35, %s3103_s0  ;;  %v2993_v10 = vpop.eup %2992 }
0x19f6   :  { %v2995_v8 = vpop.eup %2994  ;;  %v1636_v17 = vadd.f32 1.0, %v2993_v10 }
0x19f7   :  { %v1637_v4 = vadd.f32 1.0, %v2995_v8 }
0x19f8   :  { %2996 = vrcp.f32 %v1636_v17 }
0x19f9   :  { %2998 = vrcp.f32 %v1637_v4 }
0x1a02   :  { %v2997_v7 = vpop.eup %2996 }
0x1a03   :  { %v2999_v16 = vpop.eup %2998  ;;  %v1644_v6 = vmul.f32 %v2997_v7, %v1562_v52 }
0x1a04   :  { %v1645_v12 = vmul.f32 %v2999_v16, %v1563_v18 }
0x1a65   :  { %v1649_v9 = vpop.permute.xlu1 %1648 }
0x1a66   :  { %v1654_v14 = vmul.f32 %v2997_v7, %v1649_v9 }
0x1a67   :  { %v1651_v19 = vpop.permute.xlu0 %1650 }
0x1a68   :  { %1658 = vrot.lane.b32.xlu1 %v1654_v14, %s3103_s0  ;;  %v1655_v20 = vmul.f32 %v2999_v16, %v1651_v19 }
0x1a6a   :  { %1660 = vrot.lane.b32.xlu0 %v1655_v20, %s3103_s0 }
0x1ada   :  { %v1659_v21 = vpop.permute.xlu1 %1658 }
0x1adb   :  { %v1664_v26 = vadd.f32 %v1659_v21, %v1644_v6 }
0x1adc   :  { %v1661_v25 = vpop.permute.xlu0 %1660 }
0x1add   :  { %3000 = vtanh.f32 %v1664_v26  ;;  %v1665_v43 = vadd.f32 %v1661_v25, %v1645_v12 }
0x1adf   :  { %3002 = vtanh.f32 %v1665_v43 }
0x1ae7   :  { %v3001_v30 = vpop.eup %3000 }
0x1ae8   :  { %1670 = vrot.lane.b32.xlu1 %v3001_v30, %s3103_s0 }
0x1ae9   :  { %v3003_v34 = vpop.eup %3002 }
0x1aea   :  { %1672 = vrot.lane.b32.xlu0 %v3003_v34, %s3103_s0 }
0x1b5a   :  { %v1671_v36 = vpop.permute.xlu1 %1670 }
0x1b5b   :  { %v1676_v40 = vmul.f32 %v2997_v7, %v1671_v36 }
0x1b5c   :  { %v1673_v38 = vpop.permute.xlu0 %1672 }
0x1b5d   :  { %v1677_v42 = vmul.f32 %v2999_v16, %v1673_v38 }
0x1b5f   :  { %v1682_v44 = vpack.c.bf16 %v1677_v42, %v1676_v40 }
0x1b61   :  { %1684 = vrot.lane.b32.xlu1 %v1682_v44, %s3104_s4 }
0x1bd3   :  { %v1685_v45 = vpop.permute.xlu1 %1684 }
0x1bd4   :  { %2727 = vmatmul.mubr.msk.bf16.vlgmr.msra.gmra.mrb[0].mxu1 %vm272_vm2, %v1685_v45 }
0x1bd5   :  { %2731 = vmatpush3.bf16.msra.mxu1 %v3459_v22  ;;  %2734 = vmatprep.mubr.msk.bf16.mxu1 %vm3101_vm1, %v3100_v1 }
0x1bd6   :  { %2732 = vmatprep.subr.bf16.mxu1 %v3100_v1 }
0x1bd9   :  { %2733 = vmatpush3.bf16.msra.mxu1 %v3466_v24 }
0x1bda   :  { %2738 = vmatprep.subr.bf16.mxu1 %v3100_v1 }
0x1ca7   :  { %v1723_v28 = vpop.f32.mrb[0].mxu1 }
0x1ca8   :  { %v2786_v23 = vadd.f32 %v3483_v39, %v1723_v28  ;;  %v2728_v32 = vpop.f32.mrb[1].mxu1 }
0x1ca9   :  { %v1726_v46 = vpop.f32.mrb[2].mxu1 }
0x1caa   :  { %3004 = vtanh.f32 %v2786_v23  ;;  %v2787_v47 = vadd.f32 %v3483_v39, %v1726_v46  ;;  %v2729_v27 = vpop.f32.mrb[3].mxu1  ;;  %v2453_v50 = vmul.f32 -1.442695, %v2786_v23 }
0x1cac   :  { %3006 = vtanh.f32 %v2787_v47  ;;  %v2454_v51 = vmul.f32 -1.442695, %v2787_v47 }
0x1cad   :  { %3008 = vpow2.f32 %v2453_v50 }
0x1cae   :  { %3010 = vpow2.f32 %v2454_v51 }
0x1cb4   :  { %v3005_v48 = vpop.eup %3004 }
0x1cb5   :  { %1750 = vrot.lane.b32.xlu0 %v3005_v48, %s3103_s0 }
0x1cb6   :  { %v3007_v49 = vpop.eup %3006 }
0x1cb7   :  { %1752 = vrot.lane.b32.xlu1 %v3007_v49, %s3103_s0  ;;  %v3009_v29 = vpop.eup %3008 }
0x1cb8   :  { %v3011_v15 = vpop.eup %3010  ;;  %v1738_v52 = vadd.f32 1.0, %v3009_v29 }
0x1cb9   :  { %v1739_v33 = vadd.f32 1.0, %v3011_v15 }
0x1cba   :  { %3012 = vrcp.f32 %v1738_v52 }
0x1cbb   :  { %3014 = vrcp.f32 %v1739_v33 }
0x1cc4   :  { %v3013_v53 = vpop.eup %3012 }
0x1cc5   :  { %v3015_v54 = vpop.eup %3014  ;;  %v1746_v57 = vmul.f32 %v3013_v53, %v1664_v26 }
0x1cc6   :  { %v1747_v59 = vmul.f32 %v3015_v54, %v1665_v43 }
0x1d27   :  { %v1751_v18 = vpop.permute.xlu0 %1750 }
0x1d28   :  { %v1756_v11 = vmul.f32 %v3013_v53, %v1751_v18 }
0x1d29   :  { %v1753_v55 = vpop.permute.xlu1 %1752 }
0x1d2a   :  { %1760 = vrot.lane.b32.xlu0 %v1756_v11, %s3103_s0  ;;  %v1757_v56 = vmul.f32 %v3015_v54, %v1753_v55 }
0x1d2c   :  { %1762 = vrot.lane.b32.xlu1 %v1757_v56, %s3103_s0 }
0x1d9c   :  { %v1761_v13 = vpop.permute.xlu0 %1760 }
0x1d9d   :  { %v1766_v58 = vadd.f32 %v1761_v13, %v1746_v57 }
0x1d9e   :  { %v1763_v37 = vpop.permute.xlu1 %1762 }
0x1d9f   :  { %3016 = vtanh.f32 %v1766_v58  ;;  %v1767_v61 = vadd.f32 %v1763_v37, %v1747_v59 }
0x1da1   :  { %3018 = vtanh.f32 %v1767_v61 }
0x1da9   :  { %v3017_v62 = vpop.eup %3016 }
0x1daa   :  { %1772 = vrot.lane.b32.xlu0 %v3017_v62, %s3103_s0 }
0x1dab   :  { %v3019_v41 = vpop.eup %3018 }
0x1dac   :  { %1774 = vrot.lane.b32.xlu1 %v3019_v41, %s3103_s0 }
0x1e1c   :  { %v1773_v0 = vpop.permute.xlu0 %1772 }
0x1e1d   :  { %v1778_v31 = vmul.f32 %v3013_v53, %v1773_v0 }
0x1e1e   :  { %v1775_v60 = vpop.permute.xlu1 %1774 }
0x1e1f   :  { %v1779_v63 = vmul.f32 %v3015_v54, %v1775_v60 }
0x1e21   :  { %v1784_v2 = vpack.c.bf16 %v1779_v63, %v1778_v31 }
0x1e23   :  { %1786 = vrot.lane.b32.xlu0 %v1784_v2, %s3104_s4 }
0x1e95   :  { %v1787_v35 = vpop.permute.xlu0 %1786 }
0x1e96   :  { %2735 = vmatmul.mubr.msk.bf16.vlgmr.msra.gmra.mrb[4].mxu1 %vm272_vm2, %v1787_v35 }
0x1e97   :  { %2739 = vmatpush3.bf16.msra.mxu1 %v3459_v22  ;;  %2742 = vmatprep.mubr.msk.bf16.mxu1 %vm3101_vm1, %v3100_v1 }
0x1e98   :  { %2740 = vmatprep.subr.bf16.mxu1 %v3100_v1 }
0x1e9b   :  { %2741 = vmatpush3.bf16.msra.mxu1 %v3466_v24 }
0x1e9c   :  { %2746 = vmatprep.subr.bf16.mxu1 %v3100_v1 }
0x1f69   :  { %v1825_v3 = vpop.f32.mrb[4].mxu1 }
0x1f6a   :  { %v2788_v5 = vadd.f32 %v3483_v39, %v1825_v3  ;;  %v2736_v10 = vpop.f32.mrb[5].mxu1 }
0x1f6b   :  { %v1828_v8 = vpop.f32.mrb[6].mxu1 }
0x1f6c   :  { %3020 = vtanh.f32 %v2788_v5  ;;  %v2789_v17 = vadd.f32 %v3483_v39, %v1828_v8  ;;  %v2737_v4 = vpop.f32.mrb[7].mxu1  ;;  %v2456_v14 = vmul.f32 -1.442695, %v2788_v5 }
0x1f6e   :  { %3022 = vtanh.f32 %v2789_v17  ;;  %v2457_v16 = vmul.f32 -1.442695, %v2789_v17 }
0x1f6f   :  { %3024 = vpow2.f32 %v2456_v14 }
0x1f70   :  { %3026 = vpow2.f32 %v2457_v16 }
0x1f76   :  { %v3021_v7 = vpop.eup %3020 }
0x1f77   :  { %1852 = vrot.lane.b32.xlu1 %v3021_v7, %s3103_s0 }
0x1f78   :  { %v3023_v9 = vpop.eup %3022 }
0x1f79   :  { %1854 = vrot.lane.b32.xlu0 %v3023_v9, %s3103_s0  ;;  %v3025_v19 = vpop.eup %3024 }
0x1f7a   :  { %v3027_v20 = vpop.eup %3026  ;;  %v1840_v6 = vadd.f32 1.0, %v3025_v19 }
0x1f7b   :  { %v1841_v21 = vadd.f32 1.0, %v3027_v20 }
0x1f7c   :  { %3028 = vrcp.f32 %v1840_v6 }
0x1f7d   :  { %3030 = vrcp.f32 %v1841_v21 }
0x1f86   :  { %v3029_v26 = vpop.eup %3028 }
0x1f87   :  { %v3031_v43 = vpop.eup %3030  ;;  %v1848_v36 = vmul.f32 %v3029_v26, %v1766_v58 }
0x1f88   :  { %v1849_v42 = vmul.f32 %v3031_v43, %v1767_v61 }
0x1fe9   :  { %v1853_v12 = vpop.permute.xlu1 %1852 }
0x1fea   :  { %v1858_v25 = vmul.f32 %v3029_v26, %v1853_v12 }
0x1feb   :  { %v1855_v30 = vpop.permute.xlu0 %1854 }
0x1fec   :  { %1862 = vrot.lane.b32.xlu1 %v1858_v25, %s3103_s0  ;;  %v1859_v34 = vmul.f32 %v3031_v43, %v1855_v30 }
0x1fee   :  { %1864 = vrot.lane.b32.xlu0 %v1859_v34, %s3103_s0 }
0x205e   :  { %v1863_v38 = vpop.permute.xlu1 %1862 }
0x205f   :  { %v1868_v40 = vadd.f32 %v1863_v38, %v1848_v36 }
0x2060   :  { %v1865_v44 = vpop.permute.xlu0 %1864 }
0x2061   :  { %3032 = vtanh.f32 %v1868_v40  ;;  %v1869_v45 = vadd.f32 %v1865_v44, %v1849_v42 }
0x2063   :  { %3034 = vtanh.f32 %v1869_v45 }
0x206b   :  { %v3033_v28 = vpop.eup %3032 }
0x206c   :  { %1874 = vrot.lane.b32.xlu1 %v3033_v28, %s3103_s0 }
0x206d   :  { %v3035_v23 = vpop.eup %3034 }
0x206e   :  { %1876 = vrot.lane.b32.xlu0 %v3035_v23, %s3103_s0 }
0x20de   :  { %v1875_v32 = vpop.permute.xlu1 %1874 }
0x20df   :  { %v1880_v47 = vmul.f32 %v3029_v26, %v1875_v32 }
0x20e0   :  { %v1877_v46 = vpop.permute.xlu0 %1876 }
0x20e1   :  { %v1881_v27 = vmul.f32 %v3031_v43, %v1877_v46 }
0x20e3   :  { %v1886_v48 = vpack.c.bf16 %v1881_v27, %v1880_v47 }
0x20e5   :  { %1888 = vrot.lane.b32.xlu1 %v1886_v48, %s3104_s4 }
0x2157   :  { %v1889_v49 = vpop.permute.xlu1 %1888 }
0x2158   :  { %2743 = vmatmul.mubr.msk.bf16.vlgmr.msra.gmra.mrb[8].mxu1 %vm272_vm2, %v1889_v49 }
0x2159   :  { %2747 = vmatpush3.bf16.msra.mxu1 %v3459_v22  ;;  %2750 = vmatprep.mubr.msk.bf16.mxu1 %vm3101_vm1, %v3100_v1 }
0x215a   :  { %2748 = vmatprep.subr.bf16.mxu1 %v3100_v1 }
0x215d   :  { %2749 = vmatpush3.bf16.msra.mxu1 %v3466_v24 }
0x215e   :  { %2754 = vmatprep.subr.bf16.mxu1 %v3100_v1 }
0x222b   :  { %v1927_v50 = vpop.f32.mrb[8].mxu1 }
0x222c   :  { %v2790_v51 = vadd.f32 %v3483_v39, %v1927_v50  ;;  %v2744_v29 = vpop.f32.mrb[9].mxu1 }
0x222d   :  { %v1930_v15 = vpop.f32.mrb[10].mxu1 }
0x222e   :  { %3036 = vtanh.f32 %v2790_v51  ;;  %v2791_v52 = vadd.f32 %v3483_v39, %v1930_v15  ;;  %v2745_v33 = vpop.f32.mrb[11].mxu1  ;;  %v2459_v11 = vmul.f32 -1.442695, %v2790_v51 }
0x2230   :  { %3038 = vtanh.f32 %v2791_v52  ;;  %v2460_v54 = vmul.f32 -1.442695, %v2791_v52 }
0x2231   :  { %3040 = vpow2.f32 %v2459_v11 }
0x2232   :  { %3042 = vpow2.f32 %v2460_v54 }
0x2238   :  { %v3037_v53 = vpop.eup %3036 }
0x2239   :  { %1954 = vrot.lane.b32.xlu0 %v3037_v53, %s3103_s0 }
0x223a   :  { %v3039_v18 = vpop.eup %3038 }
0x223b   :  { %1956 = vrot.lane.b32.xlu1 %v3039_v18, %s3103_s0  ;;  %v3041_v55 = vpop.eup %3040 }
0x223c   :  { %v3043_v56 = vpop.eup %3042  ;;  %v1942_v57 = vadd.f32 1.0, %v3041_v55 }
0x223d   :  { %v1943_v13 = vadd.f32 1.0, %v3043_v56 }
0x223e   :  { %3044 = vrcp.f32 %v1942_v57 }
0x223f   :  { %3046 = vrcp.f32 %v1943_v13 }
0x2248   :  { %v3045_v58 = vpop.eup %3044 }
0x2249   :  { %v3047_v61 = vpop.eup %3046  ;;  %v1950_v0 = vmul.f32 %v3045_v58, %v1868_v40 }
0x224a   :  { %v1951_v63 = vmul.f32 %v3047_v61, %v1869_v45 }
0x22ab   :  { %v1955_v59 = vpop.permute.xlu0 %1954 }
0x22ac   :  { %v1960_v37 = vmul.f32 %v3045_v58, %v1955_v59 }
0x22ad   :  { %v1957_v62 = vpop.permute.xlu1 %1956 }
0x22ae   :  { %1964 = vrot.lane.b32.xlu0 %v1960_v37, %s3103_s0  ;;  %v1961_v41 = vmul.f32 %v3047_v61, %v1957_v62 }
0x22b0   :  { %1966 = vrot.lane.b32.xlu1 %v1961_v41, %s3103_s0 }
0x2320   :  { %v1965_v60 = vpop.permute.xlu0 %1964 }
0x2321   :  { %v1970_v31 = vadd.f32 %v1965_v60, %v1950_v0 }
0x2322   :  { %v1967_v2 = vpop.permute.xlu1 %1966 }
0x2323   :  { %3048 = vtanh.f32 %v1970_v31  ;;  %v1971_v35 = vadd.f32 %v1967_v2, %v1951_v63 }
0x2325   :  { %3050 = vtanh.f32 %v1971_v35 }
0x232d   :  { %v3049_v3 = vpop.eup %3048 }
0x232e   :  { %1976 = vrot.lane.b32.xlu0 %v3049_v3, %s3103_s0 }
0x232f   :  { %v3051_v5 = vpop.eup %3050 }
0x2330   :  { %1978 = vrot.lane.b32.xlu1 %v3051_v5, %s3103_s0 }
0x23a0   :  { %v1977_v10 = vpop.permute.xlu0 %1976 }
0x23a1   :  { %v1982_v17 = vmul.f32 %v3045_v58, %v1977_v10 }
0x23a2   :  { %v1979_v8 = vpop.permute.xlu1 %1978 }
0x23a3   :  { %v1983_v4 = vmul.f32 %v3047_v61, %v1979_v8 }
0x23a5   :  { %v1988_v7 = vpack.c.bf16 %v1983_v4, %v1982_v17 }
0x23a7   :  { %1990 = vrot.lane.b32.xlu0 %v1988_v7, %s3104_s4 }
0x2419   :  { %v1991_v9 = vpop.permute.xlu0 %1990 }
0x241a   :  { %2751 = vmatmul.mubr.msk.bf16.vlgmr.msra.gmra.mrb[12].mxu1 %vm272_vm2, %v1991_v9 }
0x241b   :  { %2755 = vmatpush3.bf16.msra.mxu1 %v3459_v22  ;;  %2758 = vmatprep.mubr.msk.bf16.mxu1 %vm3101_vm1, %v3100_v1 }
0x241c   :  { %2756 = vmatprep.subr.bf16.mxu1 %v3100_v1 }
0x241f   :  { %2757 = vmatpush3.bf16.msra.mxu1 %v3466_v24 }
0x2420   :  { %2762 = vmatprep.subr.bf16.mxu1 %v3100_v1 }
0x24ed   :  { %v2029_v14 = vpop.f32.mrb[12].mxu1 }
0x24ee   :  { %v2792_v16 = vadd.f32 %v3483_v39, %v2029_v14  ;;  %v2752_v19 = vpop.f32.mrb[13].mxu1 }
0x24ef   :  { %v2032_v20 = vpop.f32.mrb[14].mxu1 }
0x24f0   :  { %3052 = vtanh.f32 %v2792_v16  ;;  %v2793_v6 = vadd.f32 %v3483_v39, %v2032_v20  ;;  %v2753_v21 = vpop.f32.mrb[15].mxu1  ;;  %v2462_v25 = vmul.f32 -1.442695, %v2792_v16 }
0x24f2   :  { %3054 = vtanh.f32 %v2793_v6  ;;  %v2463_v43 = vmul.f32 -1.442695, %v2793_v6 }
0x24f3   :  { %3056 = vpow2.f32 %v2462_v25 }
0x24f4   :  { %3058 = vpow2.f32 %v2463_v43 }
0x24fa   :  { %v3053_v26 = vpop.eup %3052 }
0x24fb   :  { %2056 = vrot.lane.b32.xlu1 %v3053_v26, %s3103_s0 }
0x24fc   :  { %v3055_v12 = vpop.eup %3054 }
0x24fd   :  { %2058 = vrot.lane.b32.xlu0 %v3055_v12, %s3103_s0  ;;  %v3057_v30 = vpop.eup %3056 }
0x24fe   :  { %v3059_v34 = vpop.eup %3058  ;;  %v2044_v36 = vadd.f32 1.0, %v3057_v30 }
0x24ff   :  { %v2045_v38 = vadd.f32 1.0, %v3059_v34 }
0x2500   :  { %3060 = vrcp.f32 %v2044_v36 }
0x2501   :  { %3062 = vrcp.f32 %v2045_v38 }
0x250a   :  { %v3061_v40 = vpop.eup %3060 }
0x250b   :  { %v3063_v45 = vpop.eup %3062  ;;  %v2052_v32 = vmul.f32 %v3061_v40, %v1970_v31 }
0x250c   :  { %v2053_v27 = vmul.f32 %v3063_v45, %v1971_v35 }
0x256d   :  { %v2057_v42 = vpop.permute.xlu1 %2056 }
0x256e   :  { %v2062_v44 = vmul.f32 %v3061_v40, %v2057_v42 }
0x256f   :  { %v2059_v28 = vpop.permute.xlu0 %2058 }
0x2570   :  { %2066 = vrot.lane.b32.xlu1 %v2062_v44, %s3103_s0  ;;  %v2063_v23 = vmul.f32 %v3063_v45, %v2059_v28 }
0x2572   :  { %2068 = vrot.lane.b32.xlu0 %v2063_v23, %s3103_s0 }
0x25e2   :  { %v2067_v46 = vpop.permute.xlu1 %2066 }
0x25e3   :  { %v2072_v47 = vadd.f32 %v2067_v46, %v2052_v32 }
0x25e4   :  { %v2069_v48 = vpop.permute.xlu0 %2068 }
0x25e5   :  { %3064 = vtanh.f32 %v2072_v47  ;;  %v2073_v49 = vadd.f32 %v2069_v48, %v2053_v27 }
0x25e7   :  { %3066 = vtanh.f32 %v2073_v49 }
0x25ef   :  { %v3065_v50 = vpop.eup %3064 }
0x25f0   :  { %2078 = vrot.lane.b32.xlu1 %v3065_v50, %s3103_s0 }
0x25f1   :  { %v3067_v51 = vpop.eup %3066 }
0x25f2   :  { %2080 = vrot.lane.b32.xlu0 %v3067_v51, %s3103_s0 }
0x2662   :  { %v2079_v29 = vpop.permute.xlu1 %2078 }
0x2663   :  { %v2084_v52 = vmul.f32 %v3061_v40, %v2079_v29 }
0x2664   :  { %v2081_v15 = vpop.permute.xlu0 %2080 }
0x2665   :  { %v2085_v33 = vmul.f32 %v3063_v45, %v2081_v15 }
0x2667   :  { %v2090_v53 = vpack.c.bf16 %v2085_v33, %v2084_v52 }
0x2669   :  { %2092 = vrot.lane.b32.xlu1 %v2090_v53, %s3104_s4  ;;  %v2470_v53 = vld [vmem:[%s3635_s7] ss:$0 sm:$0xff] }
0x26db   :  { %v2093_v18 = vpop.permute.xlu1 %2092 }
0x26dc   :  { %2759 = vmatmul.mubr.msk.bf16.vlgmr.msra.gmra.mrb[16].mxu1 %vm272_vm2, %v2093_v18  ;;  %v2842_v18 = vld [vmem:[%s3636_s9] sm:$0xff]  }
0x26dd   :  { %2763 = vmatpush3.bf16.msra.mxu1 %v3459_v22  ;;  %2766 = vmatprep.mubr.msk.bf16.mxu1 %vm3101_vm1, %v3100_v1 }
0x26de   :  { %2764 = vmatprep.subr.bf16.mxu1 %v3100_v1  ;;  %2771 = vmatpush3.bf16.msra.mxu0 %v2842_v18 }
0x26df   :  { %2772 = vmatprep.subr.bf16.mxu0 %v3100_v1  ;;  %v2472_v1 = vld [vmem:[%s3638_s10] ss:$0 sm:$0xff] }
0x26e1   :  { %2765 = vmatpush3.bf16.msra.mxu1 %v3466_v24 }
0x27af   :  { %v2131_v11 = vpop.f32.mrb[16].mxu1 }
0x27b0   :  { %v2794_v54 = vadd.f32 %v3483_v39, %v2131_v11  ;;  %v2760_v55 = vpop.f32.mrb[17].mxu1 }
0x27b1   :  { %v2134_v56 = vpop.f32.mrb[18].mxu1  ;;  %v2471_v55 = vld [vmem:[%s3637_s8] ss:$0 sm:$0xff] }
0x27b2   :  { %3068 = vtanh.f32 %v2794_v54  ;;  %v2795_v57 = vadd.f32 %v3483_v39, %v2134_v56  ;;  %v2761_v13 = vpop.f32.mrb[19].mxu1  ;;  %v2465_v59 = vmul.f32 -1.442695, %v2794_v54  ;;  %v2843_v54 = vld [vmem:[%s3636_s9 + $0x8] sm:$0xff]  }
0x27b3   :  { %2773 = vmatpush3.bf16.msra.mxu0 %v2843_v54 }
0x27b4   :  { %3070 = vtanh.f32 %v2795_v57  ;;  %v2466_v37 = vmul.f32 -1.442695, %v2795_v57 }
0x27b5   :  { %3072 = vpow2.f32 %v2465_v59 }
0x27b6   :  { %3074 = vpow2.f32 %v2466_v37 }
0x27bc   :  { %v3069_v58 = vpop.eup %3068 }
0x27bd   :  { %2158 = vrot.lane.b32.xlu0 %v3069_v58, %s3103_s0 }
0x27be   :  { %v3071_v22 = vpop.eup %3070 }
0x27bf   :  { %2160 = vrot.lane.b32.xlu1 %v3071_v22, %s3103_s0  ;;  %v3073_v24 = vpop.eup %3072 }
0x27c0   :  { %v3075_v61 = vpop.eup %3074  ;;  %v2146_v62 = vadd.f32 1.0, %v3073_v24 }
0x27c1   :  { %v2147_v41 = vadd.f32 1.0, %v3075_v61 }
0x27c2   :  { %3076 = vrcp.f32 %v2146_v62 }
0x27c3   :  { %3078 = vrcp.f32 %v2147_v41 }
0x27cc   :  { %v3077_v0 = vpop.eup %3076 }
0x27cd   :  { %v3079_v63 = vpop.eup %3078  ;;  %v2154_v3 = vmul.f32 %v3077_v0, %v2072_v47 }
0x27ce   :  { %v2155_v8 = vmul.f32 %v3079_v63, %v2073_v49 }
0x282f   :  { %v2159_v60 = vpop.permute.xlu0 %2158 }
0x2830   :  { %v2164_v31 = vmul.f32 %v3077_v0, %v2159_v60 }
0x2831   :  { %v2161_v2 = vpop.permute.xlu1 %2160 }
0x2832   :  { %2168 = vrot.lane.b32.xlu0 %v2164_v31, %s3103_s0  ;;  %v2165_v35 = vmul.f32 %v3079_v63, %v2161_v2 }
0x2834   :  { %2170 = vrot.lane.b32.xlu1 %v2165_v35, %s3103_s0 }
0x28a4   :  { %v2169_v5 = vpop.permute.xlu0 %2168 }
0x28a5   :  { %v2174_v10 = vadd.f32 %v2169_v5, %v2154_v3 }
0x28a6   :  { %v2171_v17 = vpop.permute.xlu1 %2170 }
0x28a7   :  { %3080 = vtanh.f32 %v2174_v10  ;;  %v2175_v4 = vadd.f32 %v2171_v17, %v2155_v8 }
0x28a9   :  { %3082 = vtanh.f32 %v2175_v4 }
0x28b1   :  { %v3081_v7 = vpop.eup %3080 }
0x28b2   :  { %2180 = vrot.lane.b32.xlu0 %v3081_v7, %s3103_s0 }
0x28b3   :  { %v3083_v9 = vpop.eup %3082 }
0x28b4   :  { %2182 = vrot.lane.b32.xlu1 %v3083_v9, %s3103_s0 }
0x2924   :  { %v2181_v14 = vpop.permute.xlu0 %2180 }
0x2925   :  { %v2186_v19 = vmul.f32 %v3077_v0, %v2181_v14 }
0x2926   :  { %v2183_v16 = vpop.permute.xlu1 %2182 }
0x2927   :  { %v2187_v20 = vmul.f32 %v3079_v63, %v2183_v16 }
0x2929   :  { %v2192_v6 = vpack.c.bf16 %v2187_v20, %v2186_v19 }
0x292b   :  { %2194 = vrot.lane.b32.xlu0 %v2192_v6, %s3104_s4 }
0x299d   :  { %v2195_v21 = vpop.permute.xlu0 %2194 }
0x299e   :  { %2767 = vmatmul.mubr.msk.bf16.vlgmr.msra.gmra.mrb[20].mxu1 %vm272_vm2, %v2195_v21 }
0x2a71   :  { %v2233_v26 = vpop.f32.mrb[20].mxu1 }
0x2a72   :  { %v2796_v12 = vadd.f32 %v3483_v39, %v2233_v26  ;;  %v2768_v25 = vpop.f32.mrb[21].mxu1 }
0x2a73   :  { %v2236_v43 = vpop.f32.mrb[22].mxu1 }
0x2a74   :  { %3084 = vtanh.f32 %v2796_v12  ;;  %v2797_v30 = vadd.f32 %v3483_v39, %v2236_v43  ;;  %v2769_v34 = vpop.f32.mrb[23].mxu1  ;;  %v2468_v40 = vmul.f32 -1.442695, %v2796_v12 }
0x2a76   :  { %3086 = vtanh.f32 %v2797_v30  ;;  %v2469_v42 = vmul.f32 -1.442695, %v2797_v30 }
0x2a77   :  { %3088 = vpow2.f32 %v2468_v40 }
0x2a78   :  { %3090 = vpow2.f32 %v2469_v42 }
0x2a7e   :  { %v3085_v36 = vpop.eup %3084 }
0x2a7f   :  { %2260 = vrot.lane.b32.xlu1 %v3085_v36, %s3103_s0 }
0x2a80   :  { %v3087_v38 = vpop.eup %3086 }
0x2a81   :  { %2262 = vrot.lane.b32.xlu0 %v3087_v38, %s3103_s0  ;;  %v3089_v44 = vpop.eup %3088 }
0x2a82   :  { %v3091_v45 = vpop.eup %3090  ;;  %v2248_v28 = vadd.f32 1.0, %v3089_v44 }
0x2a83   :  { %v2249_v23 = vadd.f32 1.0, %v3091_v45 }
0x2a84   :  { %3092 = vrcp.f32 %v2248_v28 }
0x2a85   :  { %3094 = vrcp.f32 %v2249_v23 }
0x2a8e   :  { %v3093_v32 = vpop.eup %3092 }
0x2a8f   :  { %v3095_v47 = vpop.eup %3094  ;;  %v2256_v49 = vmul.f32 %v3093_v32, %v2174_v10 }
0x2a90   :  { %v2257_v29 = vmul.f32 %v3095_v47, %v2175_v4 }
0x2af1   :  { %v2261_v39 = vpop.permute.xlu1 %2260 }
0x2af2   :  { %v2266_v46 = vmul.f32 %v3093_v32, %v2261_v39 }
0x2af3   :  { %v2263_v27 = vpop.permute.xlu0 %2262 }
0x2af4   :  { %2270 = vrot.lane.b32.xlu1 %v2266_v46, %s3103_s0  ;;  %v2267_v48 = vmul.f32 %v3095_v47, %v2263_v27 }
0x2af6   :  { %2272 = vrot.lane.b32.xlu0 %v2267_v48, %s3103_s0 }
0x2b66   :  { %v2271_v50 = vpop.permute.xlu1 %2270 }
0x2b67   :  { %v2276_v51 = vadd.f32 %v2271_v50, %v2256_v49 }
0x2b68   :  { %v2273_v15 = vpop.permute.xlu0 %2272 }
0x2b69   :  { %3096 = vtanh.f32 %v2276_v51  ;;  %v2277_v52 = vadd.f32 %v2273_v15, %v2257_v29 }
0x2b6b   :  { %3098 = vtanh.f32 %v2277_v52 }
0x2b73   :  { %v3097_v33 = vpop.eup %3096 }
0x2b74   :  { %2282 = vrot.lane.b32.xlu1 %v3097_v33, %s3103_s0 }
0x2b75   :  { %v3099_v11 = vpop.eup %3098 }
0x2b76   :  { %2284 = vrot.lane.b32.xlu0 %v3099_v11, %s3103_s0 }
0x2b78   :  { %2296 = vrot.lane.b32.xlu1 %v2470_v53, %s3104_s4 }
0x2b7a   :  { %2307 = vrot.lane.b32.xlu0 %v2471_v55, %s3104_s4 }
0x2be6   :  { %v2283_v56 = vpop.permute.xlu1 %2282 }
0x2be7   :  { %v2288_v57 = vmul.f32 %v3093_v32, %v2283_v56 }
0x2be8   :  { %v2285_v13 = vpop.permute.xlu0 %2284 }
0x2be9   :  { %v2289_v58 = vmul.f32 %v3095_v47, %v2285_v13 }
0x2bea   :  { %v2297_v22 = vpop.permute.xlu1 %2296 }
0x2beb   :  { %v2299_v59 = vmul.f32 %v2297_v22, %v2288_v57  ;;  %v2300_v37 = vmul.f32 %v2297_v22, %v2289_v58 }
0x2bec   :  { %v2308_v24 = vpop.permute.xlu0 %2307 }
0x2bed   :  { %v2310_v61 = vadd.f32 %v2308_v24, %v2299_v59  ;;  %v2311_v62 = vadd.f32 %v2308_v24, %v2300_v37 }
0x2bef   :  { %v2312_v41 = vmax.f32 %v2310_v61, 0.0  ;;  %v2313_v0 = vmax.f32 %v2311_v62, 0.0 }
0x2bf1   :  { %v2314_v60 = vpack.c.bf16 %v2313_v0, %v2312_v41 }
0x2bf3   :  { %2327 = vrot.lane.b32.xlu1 %v2314_v60, %s3104_s4 }
0x2c65   :  { %v2328_v31 = vpop.permute.xlu1 %2327 }
0x2c66   :  { %2775 = vmatmul.mubr.msk.bf16.vlgmr.msra.gmra.mrb[56].mxu0 %vm272_vm2, %v2328_v31 }
0x2d39   :  { %v2378_v63 = vpop.f32.mrb[56].mxu0 }
0x2d3a   :  { %v2379_v2 = vadd.f32 %v2472_v1, %v2378_v63  ;;  %v2776_v35 = vpop.f32.mrb[57].mxu0 }
0x2d3b   :  { %v2381_v3 = vpop.f32.mrb[58].mxu0 }
0x2d3c   :  { %2385 = vst [vmem:[%s3639_s11] sm:$0xff] %v2379_v2  ;;  %v2382_v5 = vadd.f32 %v2472_v1, %v2381_v3  ;;  %v2777_v10 = vpop.f32.mrb[59].mxu0 }
0x2d3e   :  { %2386 = vst [vmem:[%s3639_s11 + $0x8] sm:$0xff] %v2382_v5 }

</bundles_post_ra>
